<compile_context>
chip_gen: v7x
topology: tpu7x:2x2x1
jax: 0.10.0
libtpu: 0.0.40
codegen_flags: <defaults>
</compile_context>

<pallas_src>
import functools

import jax
import jax.numpy as jnp
from jax.experimental import pallas as pl
from jax.experimental.pallas import tpu as pltpu

_EPS = 1e-6
_VMEM_LIMIT = 32 * 1024 * 1024        # explicit scoped-VMEM budget, safe on v5e/v6e/v7x
_TOKEN_TILE_TARGET = 256              # token tile target (multiple of 8, VMEM-friendly)


def _pick_tile(t, target=_TOKEN_TILE_TARGET):
    """Largest divisor of t that is <= target and a multiple of 8; else the full extent."""
    if t <= target:
        return t
    for cand in range(target, 7, -1):
        if cand % 8 == 0 and t % cand == 0:
            return cand
    return t


def _layer_norm_modulate(x_f32, shift, scale):
    """LayerNorm(eps=1e-6, no affine) followed by adaLN modulate, all in f32."""
    mean = jnp.mean(x_f32, axis=-1, keepdims=True)
    xc = x_f32 - mean
    var = jnp.mean(xc * xc, axis=-1, keepdims=True)
    xn = xc * jax.lax.rsqrt(var + _EPS)
    return xn * (1.0 + scale) + shift


# ----------------------------------------------------------------------------------------
# Kernels
# ----------------------------------------------------------------------------------------
def _ln_mod_linear_kernel(x_ref, shift_ref, scale_ref, w_ref, b_ref, o_ref):
    """o = (LN(x) * (1 + scale) + shift) @ W + b  for one (batch, token-tile) block."""
    xm = _layer_norm_modulate(x_ref[...].astype(jnp.float32),
                              shift_ref[...], scale_ref[...])
    out = jnp.dot(xm.astype(w_ref.dtype), w_ref[...],
                  preferred_element_type=jnp.float32)
    o_ref[...] = (out + b_ref[...].astype(jnp.float32)).astype(o_ref.dtype)


def _mha_kernel(q_ref, k_ref, v_ref, o_ref, *, sm_scale):
    """Softmax attention for one (batch, head, query-tile) block; full K/V resident."""
    q = q_ref[...].astype(jnp.float32) * sm_scale           # (Tq, Dh)
    k = k_ref[...].astype(jnp.float32)                      # (M, Dh)
    s = jax.lax.dot_general(q, k, (((1,), (1,)), ((), ())),
                            preferred_element_type=jnp.float32)   # (Tq, M)
    s_max = jnp.max(s, axis=-1, keepdims=True)
    p = jnp.exp(s - s_max)
    p = p / jnp.sum(p, axis=-1, keepdims=True)
    out = jnp.dot(p.astype(v_ref.dtype), v_ref[...],
                  preferred_element_type=jnp.float32)
    o_ref[...] = out.astype(o_ref.dtype)


def _linear_gate_res_kernel(a_ref, res_ref, gate_ref, w_ref, b_ref, o_ref):
    """o = res + gate * (a @ W + b)   (attention output projection + gated residual)."""
    y = jnp.dot(a_ref[...].astype(w_ref.dtype), w_ref[...],
                preferred_element_type=jnp.float32)
    y = y + b_ref[...].astype(jnp.float32)
    o_ref[...] = (res_ref[...].astype(jnp.float32)
                  + gate_ref[...] * y).astype(o_ref.dtype)


def _mlp_kernel(x_ref, shift_ref, scale_ref, gate_ref,
                w1_ref, b1_ref, w2_ref, b2_ref, o_ref):
    """o = x + gate * (GELU_tanh((LN(x) mod) @ W1 + b1) @ W2 + b2)."""
    x = x_ref[...].astype(jnp.float32)
    xm = _layer_norm_modulate(x, shift_ref[...], scale_ref[...])
    h = jnp.dot(xm.astype(w1_ref.dtype), w1_ref[...],
                preferred_element_type=jnp.float32)
    h = jax.nn.gelu(h + b1_ref[...].astype(jnp.float32), approximate=True)
    y = jnp.dot(h.astype(w2_ref.dtype), w2_ref[...],
                preferred_element_type=jnp.float32)
    y = y + b2_ref[...].astype(jnp.float32)
    o_ref[...] = (x + gate_ref[...] * y).astype(o_ref.dtype)


# ----------------------------------------------------------------------------------------
# pallas_call wrappers
# ----------------------------------------------------------------------------------------
def _compiler_params(n_axes):
    return pltpu.CompilerParams(dimension_semantics=("parallel",) * n_axes,
                                vmem_limit_bytes=_VMEM_LIMIT)


def ln_mod_linear(x, shift, scale, w, b):
    """x:(B,L,H), shift/scale:(B,1,H) f32, w:(H,N), b:(N,) -> (B,L,N)."""
    B, L, H = x.shape
    N = w.shape[1]
    Tt = _pick_tile(L)
    cost = pl.CostEstimate(
        flops=2 * B * L * H * N, transcendentals=0,
        bytes_accessed=4 * (B * L * (H + N) + 2 * B * H + H * N + N))
    return pl.pallas_call(
        _ln_mod_linear_kernel,
        out_shape=jax.ShapeDtypeStruct((B, L, N), x.dtype),
        grid_spec=pltpu.PrefetchScalarGridSpec(
            num_scalar_prefetch=0,
            grid=(B, L // Tt),
            in_specs=[
                pl.BlockSpec((None, Tt, H), lambda bi, ti: (bi, ti, 0)),
                pl.BlockSpec((None, 1, H), lambda bi, ti: (bi, 0, 0)),
                pl.BlockSpec((None, 1, H), lambda bi, ti: (bi, 0, 0)),
                pl.BlockSpec((H, N), lambda bi, ti: (0, 0)),
                pl.BlockSpec((1, N), lambda bi, ti: (0, 0)),
            ],
            out_specs=pl.BlockSpec((None, Tt, N), lambda bi, ti: (bi, ti, 0)),
        ),
        compiler_params=_compiler_params(2),
        cost_estimate=cost,
    )(x, shift, scale, w, b.reshape(1, N))


def mha(q, k, v, *, sm_scale):
    """q:(B,nh,T,Dh), k/v:(B,nh,M,Dh) -> (B,nh,T,Dh)."""
    B, nh, T, Dh = q.shape
    M = k.shape[2]
    Tt = _pick_tile(T)
    cost = pl.CostEstimate(
        flops=4 * B * nh * T * M * Dh,
        transcendentals=B * nh * T * M,
        bytes_accessed=4 * B * nh * (2 * T * Dh + 2 * M * Dh))
    return pl.pallas_call(
        functools.partial(_mha_kernel, sm_scale=sm_scale),
        out_shape=jax.ShapeDtypeStruct((B, nh, T, Dh), q.dtype),
        grid_spec=pltpu.PrefetchScalarGridSpec(
            num_scalar_prefetch=0,
            grid=(B, nh, T // Tt),
            in_specs=[
                pl.BlockSpec((None, None, Tt, Dh), lambda bi, hi, ti: (bi, hi, ti, 0)),
                pl.BlockSpec((None, None, M, Dh), lambda bi, hi, ti: (bi, hi, 0, 0)),
                pl.BlockSpec((None, None, M, Dh), lambda bi, hi, ti: (bi, hi, 0, 0)),
            ],
            out_specs=pl.BlockSpec((None, None, Tt, Dh),
                                   lambda bi, hi, ti: (bi, hi, ti, 0)),
        ),
        compiler_params=_compiler_params(3),
        cost_estimate=cost,
    )(q, k, v)


def linear_gate_residual(a, res, gate, w, b):
    """a,res:(B,T,H), gate:(B,1,H) f32, w:(H,H), b:(H,) -> res + gate*(a@w+b)."""
    B, T, H = a.shape
    N = w.shape[1]
    Tt = _pick_tile(T)
    cost = pl.CostEstimate(
        flops=2 * B * T * H * N, transcendentals=0,
        bytes_accessed=4 * (B * T * (2 * H + N) + B * H + H * N + N))
    return pl.pallas_call(
        _linear_gate_res_kernel,
        out_shape=jax.ShapeDtypeStruct((B, T, N), res.dtype),
        grid_spec=pltpu.PrefetchScalarGridSpec(
            num_scalar_prefetch=0,
            grid=(B, T // Tt),
            in_specs=[
                pl.BlockSpec((None, Tt, H), lambda bi, ti: (bi, ti, 0)),
                pl.BlockSpec((None, Tt, N), lambda bi, ti: (bi, ti, 0)),
                pl.BlockSpec((None, 1, N), lambda bi, ti: (bi, 0, 0)),
                pl.BlockSpec((H, N), lambda bi, ti: (0, 0)),
                pl.BlockSpec((1, N), lambda bi, ti: (0, 0)),
            ],
            out_specs=pl.BlockSpec((None, Tt, N), lambda bi, ti: (bi, ti, 0)),
        ),
        compiler_params=_compiler_params(2),
        cost_estimate=cost,
    )(a, res, gate, w, b.reshape(1, N))


def mlp_block(x, shift, scale, gate, w1, b1, w2, b2):
    """Fused adaLN-modulated MLP with gated residual. x:(B,T,H) -> (B,T,H)."""
    B, T, H = x.shape
    Hm = w1.shape[1]
    Tt = _pick_tile(T)
    cost = pl.CostEstimate(
        flops=4 * B * T * H * Hm,
        transcendentals=B * T * Hm,
        bytes_accessed=4 * (2 * B * T * H + 3 * B * H + 2 * H * Hm + Hm + H))
    return pl.pallas_call(
        _mlp_kernel,
        out_shape=jax.ShapeDtypeStruct((B, T, H), x.dtype),
        grid_spec=pltpu.PrefetchScalarGridSpec(
            num_scalar_prefetch=0,
            grid=(B, T // Tt),
            in_specs=[
                pl.BlockSpec((None, Tt, H), lambda bi, ti: (bi, ti, 0)),
                pl.BlockSpec((None, 1, H), lambda bi, ti: (bi, 0, 0)),
                pl.BlockSpec((None, 1, H), lambda bi, ti: (bi, 0, 0)),
                pl.BlockSpec((None, 1, H), lambda bi, ti: (bi, 0, 0)),
                pl.BlockSpec((H, Hm), lambda bi, ti: (0, 0)),
                pl.BlockSpec((1, Hm), lambda bi, ti: (0, 0)),
                pl.BlockSpec((Hm, H), lambda bi, ti: (0, 0)),
                pl.BlockSpec((1, H), lambda bi, ti: (0, 0)),
            ],
            out_specs=pl.BlockSpec((None, Tt, H), lambda bi, ti: (bi, ti, 0)),
        ),
        compiler_params=_compiler_params(2),
        cost_estimate=cost,
    )(x, shift, scale, gate, w1, b1.reshape(1, Hm), w2, b2.reshape(1, H))


# ----------------------------------------------------------------------------------------
# Full DiT block forward
# ----------------------------------------------------------------------------------------
def dit_block_with_cross_attention(x, c, y, p, *, num_heads):
    """x:(B,T,H), c:(B,H), y:(B,M,H). Returns (B,T,H). Dropouts are p=0 (inference)."""
    B, T, H = x.shape
    Dh = H // num_heads
    sm_scale = Dh ** -0.5

    # adaLN modulation: tiny (B,H)@(H,9H) GEMV -- hoisted to XLA per perf review so the
    # 9H-wide weight never lives (double-buffered) in kernel VMEM.
    c32 = c.astype(jnp.float32)
    ada = (c32 * jax.nn.sigmoid(c32)) @ p["w_ada"].astype(jnp.float32) \
        + p["b_ada"].astype(jnp.float32)
    (sh_msa, sc_msa, g_msa,
     sh_mca, sc_mca, g_mca,
     sh_mlp, sc_mlp, g_mlp) = [m.reshape(B, 1, H) for m in jnp.split(ada, 9, axis=-1)]

    def to_heads(t):                                    # (B,L,H) -> (B,nh,L,Dh)
        L = t.shape[1]
        return t.reshape(B, L, num_heads, Dh).transpose(0, 2, 1, 3)

    def from_heads(t):                                  # (B,nh,L,Dh) -> (B,L,H)
        L = t.shape[2]
        return t.transpose(0, 2, 1, 3).reshape(B, L, H)

    # ---- self-attention branch -----------------------------------------------------
    qkv = ln_mod_linear(x, sh_msa, sc_msa, p["w_qkv"], p["b_qkv"])       # (B,T,3H)
    q, k, v = jnp.split(qkv, 3, axis=-1)
    attn = from_heads(mha(to_heads(q), to_heads(k), to_heads(v), sm_scale=sm_scale))
    x = linear_gate_residual(attn, x, g_msa, p["w_proj"], p["b_proj"])

    # ---- cross-attention branch ----------------------------------------------------
    qx = ln_mod_linear(x, sh_mca, sc_mca, p["w_q"], p["b_q"])            # (B,T,H)
    kv = ln_mod_linear(y, sh_mca, sc_mca, p["w_kv"], p["b_kv"])          # (B,M,2H)
    k, v = jnp.split(kv, 2, axis=-1)
    attn = from_heads(mha(to_heads(qx), to_heads(k), to_heads(v), sm_scale=sm_scale))
    x = linear_gate_residual(attn, x, g_mca, p["w_cproj"], p["b_cproj"])

    # ---- MLP branch ------------------------------------------------------------------
    x = mlp_block(x, sh_mlp, sc_mlp, g_mlp,
                  p["w_fc1"], p["b_fc1"], p["w_fc2"], p["b_fc2"])
    return x


# ----------------------------------------------------------------------------------------
# Pure-JAX reference mirroring the PyTorch forward
# ----------------------------------------------------------------------------------------
def dit_block_ref(x, c, y, p, *, num_heads):
    B, T, H = x.shape
    Dh = H // num_heads
    sm_scale = Dh ** -0.5

    def ln(t):
        mu = jnp.mean(t, axis=-1, keepdims=True)
        var = jnp.mean((t - mu) ** 2, axis=-1, keepdims=True)
        return (t - mu) / jnp.sqrt(var + _EPS)

    def modulate(t, shift, scale):
        return t * (1.0 + scale[:, None, :]) + shift[:, None, :]

    def to_heads(t):
        L = t.shape[1]
        return t.reshape(B, L, num_heads, Dh).transpose(0, 2, 1, 3)

    def from_heads(t):
        L = t.shape[2]
        return t.transpose(0, 2, 1, 3).reshape(B, L, H)

    def attention(q, k, v):
        s = jnp.einsum("bhqd,bhkd->bhqk", q * sm_scale, k)
        a = jax.nn.softmax(s, axis=-1)
        return jnp.einsum("bhqk,bhkd->bhqd", a, v)

    silu = c * jax.nn.sigmoid(c)
    ada = silu @ p["w_ada"] + p["b_ada"]
    (sh_msa, sc_msa, g_msa, sh_mca, sc_mca, g_mca,
     sh_mlp, sc_mlp, g_mlp) = jnp.split(ada, 9, axis=-1)

    # self-attention
    xm = modulate(ln(x), sh_msa, sc_msa)
    q, k, v = jnp.split(xm @ p["w_qkv"] + p["b_qkv"], 3, axis=-1)
    att = from_heads(attention(to_heads(q), to_heads(k), to_heads(v)))
    x = x + g_msa[:, None, :] * (att @ p["w_proj"] + p["b_proj"])

    # cross-attention
    xm = modulate(ln(x), sh_mca, sc_mca)
    ym = modulate(ln(y), sh_mca, sc_mca)
    qx = xm @ p["w_q"] + p["b_q"]
    k, v = jnp.split(ym @ p["w_kv"] + p["b_kv"], 2, axis=-1)
    att = from_heads(attention(to_heads(qx), to_heads(k), to_heads(v)))
    x = x + g_mca[:, None, :] * (att @ p["w_cproj"] + p["b_cproj"])

    # MLP
    xm = modulate(ln(x), sh_mlp, sc_mlp)
    h = jax.nn.gelu(xm @ p["w_fc1"] + p["b_fc1"], approximate=True)
    x = x + g_mlp[:, None, :] * (h @ p["w_fc2"] + p["b_fc2"])
    return x


if __name__ == "__main__":
    # Small shapes: batch=2, tokens=8, cross tokens=8, hidden=32, heads=4, mlp_ratio=4.
    B, T, M, H = 2, 8, 8, 32
    num_heads = 4
    Hm = 4 * H

    key = jax.random.PRNGKey(0)
    ks = jax.random.split(key, 22)

    x = jax.random.normal(ks[0], (B, T, H), jnp.float32)
    c = jax.random.normal(ks[1], (B, H), jnp.float32)
    y = jax.random.normal(ks[2], (B, M, H), jnp.float32)

    def wmat(k, shape, fan_in):
        return jax.random.normal(k, shape, jnp.float32) * (1.0 / fan_in) ** 0.5

    def bvec(k, n):
        return 0.02 * jax.random.normal(k, (n,), jnp.float32)

    # Weights stored (in_features, out_features).
    params = {
        "w_ada":   wmat(ks[3], (H, 9 * H), H),   "b_ada":   bvec(ks[4], 9 * H),
        "w_qkv":   wmat(ks[5], (H, 3 * H), H),   "b_qkv":   bvec(ks[6], 3 * H),
        "w_proj":  wmat(ks[7], (H, H), H),       "b_proj":  bvec(ks[8], H),
        "w_q":     wmat(ks[9], (H, H), H),       "b_q":     bvec(ks[10], H),
        "w_kv":    wmat(ks[11], (H, 2 * H), H),  "b_kv":    bvec(ks[12], 2 * H),
        "w_cproj": wmat(ks[13], (H, H), H),      "b_cproj": bvec(ks[14], H),
        "w_fc1":   wmat(ks[15], (H, Hm), H),     "b_fc1":   bvec(ks[16], Hm),
        "w_fc2":   wmat(ks[17], (Hm, H), Hm),    "b_fc2":   bvec(ks[18], H),
    }

    fwd = jax.jit(functools.partial(dit_block_with_cross_attention, num_heads=num_heads))
    out = jax.block_until_ready(fwd(x, c, y, params))

    ref = dit_block_ref(x, c, y, params, num_heads=num_heads)
    assert out.shape == (B, T, H), out.shape
    max_err = float(jnp.max(jnp.abs(out - ref)))
    assert jnp.allclose(out, ref, atol=2e-3, rtol=2e-3), f"mismatch vs reference, max_err={max_err}"

    print("KERNEL_OK")
</pallas_src>

<mosaic_0001>
module attributes {stable_mosaic.version = 11 : i64} {
  func.func @_ln_mod_linear_kernel(%arg0: i32, %arg1: i32, %arg2: memref<1x8x32xf32, #tpu.memory_space<vmem>>, %arg3: memref<1x1x32xf32, #tpu.memory_space<vmem>>, %arg4: memref<1x1x32xf32, #tpu.memory_space<vmem>>, %arg5: memref<32x96xf32, #tpu.memory_space<vmem>>, %arg6: memref<1x96xf32, #tpu.memory_space<vmem>>, %arg7: memref<1x8x96xf32, #tpu.memory_space<vmem>>) attributes {dimension_semantics = [#tpu.dimension_semantics<parallel>, #tpu.dimension_semantics<parallel>], iteration_bounds = array<i64: 2, 1>, scalar_prefetch = 0 : i64, scratch_operands = 0 : i64, tpu.core_type = #tpu.core_type<tc>, window_params = [{transform_indices = @transform_0, window_bounds = array<i64: 1, 8, 32>}, {transform_indices = @transform_1, window_bounds = array<i64: 1, 1, 32>}, {transform_indices = @transform_2, window_bounds = array<i64: 1, 1, 32>}, {pipeline_mode = #tpu.pipeline_mode<synchronous>, transform_indices = @transform_3, window_bounds = array<i64: 32, 96>}, {pipeline_mode = #tpu.pipeline_mode<synchronous>, transform_indices = @transform_4, window_bounds = array<i64: 1, 96>}, {transform_indices = @transform_5, window_bounds = array<i64: 1, 8, 96>}]} {
    %c0 = arith.constant 0 : index
    %c0_0 = arith.constant 0 : index
    %c0_1 = arith.constant 0 : index
    %0 = vector.load %arg2[%c0, %c0_0, %c0_1] : memref<1x8x32xf32, #tpu.memory_space<vmem>>, vector<1x8x32xf32>
    %1 = vector.shape_cast %0 : vector<1x8x32xf32> to vector<8x32xf32>
    %c0_2 = arith.constant 0 : index
    %c0_3 = arith.constant 0 : index
    %c0_4 = arith.constant 0 : index
    %2 = vector.load %arg3[%c0_2, %c0_3, %c0_4] : memref<1x1x32xf32, #tpu.memory_space<vmem>>, vector<1x1x32xf32>
    %3 = vector.shape_cast %2 : vector<1x1x32xf32> to vector<1x32xf32>
    %c0_5 = arith.constant 0 : index
    %c0_6 = arith.constant 0 : index
    %c0_7 = arith.constant 0 : index
    %4 = vector.load %arg4[%c0_5, %c0_6, %c0_7] : memref<1x1x32xf32, #tpu.memory_space<vmem>>, vector<1x1x32xf32>
    %5 = vector.shape_cast %4 : vector<1x1x32xf32> to vector<1x32xf32>
    %cst = arith.constant dense<0.000000e+00> : vector<8xf32>
    %6 = vector.multi_reduction <add>, %1, %cst [1] : vector<8x32xf32> to vector<8xf32>
    %7 = vector.shape_cast %6 : vector<8xf32> to vector<8x1xf32>
    %cst_8 = arith.constant 3.200000e+01 : f32
    %8 = vector.broadcast %cst_8 : f32 to vector<8x1xf32>
    %9 = arith.divf %7, %8 : vector<8x1xf32>
    %10 = vector.broadcast %9 : vector<8x1xf32> to vector<8x32xf32>
    %11 = arith.subf %1, %10 : vector<8x32xf32>
    %12 = arith.mulf %11, %11 : vector<8x32xf32>
    %cst_9 = arith.constant dense<0.000000e+00> : vector<8xf32>
    %13 = vector.multi_reduction <add>, %12, %cst_9 [1] : vector<8x32xf32> to vector<8xf32>
    %14 = vector.shape_cast %13 : vector<8xf32> to vector<8x1xf32>
    %cst_10 = arith.constant 3.200000e+01 : f32
    %15 = vector.broadcast %cst_10 : f32 to vector<8x1xf32>
    %16 = arith.divf %14, %15 : vector<8x1xf32>
    %cst_11 = arith.constant 9.99999997E-7 : f32
    %17 = vector.broadcast %cst_11 : f32 to vector<8x1xf32>
    %18 = arith.addf %16, %17 : vector<8x1xf32>
    %19 = math.rsqrt %18 : vector<8x1xf32>
    %20 = vector.broadcast %19 : vector<8x1xf32> to vector<8x32xf32>
    %21 = arith.mulf %11, %20 : vector<8x32xf32>
    %cst_12 = arith.constant 1.000000e+00 : f32
    %22 = vector.broadcast %cst_12 : f32 to vector<1x32xf32>
    %23 = arith.addf %22, %5 : vector<1x32xf32>
    %24 = vector.broadcast %23 : vector<1x32xf32> to vector<8x32xf32>
    %25 = arith.mulf %21, %24 : vector<8x32xf32>
    %26 = vector.broadcast %3 : vector<1x32xf32> to vector<8x32xf32>
    %27 = arith.addf %25, %26 : vector<8x32xf32>
    %c0_13 = arith.constant 0 : index
    %c0_14 = arith.constant 0 : index
    %28 = vector.load %arg5[%c0_13, %c0_14] : memref<32x96xf32, #tpu.memory_space<vmem>>, vector<32x96xf32>
    %cst_15 = arith.constant dense<0.000000e+00> : vector<8x96xf32>
    %29 = tpu.matmul %27, %28, %cst_15 {dimension_numbers = #tpu.dot_dimension_numbers<[1], [0], [0], [1], [0, 0, 1, 1], [], []>} : vector<8x32xf32>, vector<32x96xf32>, vector<8x96xf32> -> vector<8x96xf32>
    %c0_16 = arith.constant 0 : index
    %c0_17 = arith.constant 0 : index
    %30 = vector.load %arg6[%c0_16, %c0_17] : memref<1x96xf32, #tpu.memory_space<vmem>>, vector<1x96xf32>
    %31 = vector.broadcast %30 : vector<1x96xf32> to vector<8x96xf32>
    %32 = arith.addf %29, %31 : vector<8x96xf32>
    %c0_18 = arith.constant 0 : index
    %c0_19 = arith.constant 0 : index
    %c0_20 = arith.constant 0 : index
    %33 = vector.load %arg7[%c0_18, %c0_19, %c0_20] : memref<1x8x96xf32, #tpu.memory_space<vmem>>, vector<1x8x96xf32>
    %34 = vector.shape_cast %33 : vector<1x8x96xf32> to vector<8x96xf32>
    %35 = vector.shape_cast %32 : vector<8x96xf32> to vector<1x8x96xf32>
    tpu.vector_store %arg7[%c0_18, %c0_19, %c0_20], %35 {strides = array<i32>} : memref<1x8x96xf32, #tpu.memory_space<vmem>>, vector<1x8x96xf32>,
    return
  }
  func.func @transform_0(%arg0: i32, %arg1: i32) -> (i32, i32, i32) {
    %c0_i32 = arith.constant 0 : i32
    %c0_i32_0 = arith.constant 0 : i32
    return %arg0, %arg1, %c0_i32 : i32, i32, i32
  }
  func.func @transform_1(%arg0: i32, %arg1: i32) -> (i32, i32, i32) {
    %c0_i32 = arith.constant 0 : i32
    %c0_i32_0 = arith.constant 0 : i32
    %c0_i32_1 = arith.constant 0 : i32
    return %arg0, %c0_i32, %c0_i32_0 : i32, i32, i32
  }
  func.func @transform_2(%arg0: i32, %arg1: i32) -> (i32, i32, i32) {
    %c0_i32 = arith.constant 0 : i32
    %c0_i32_0 = arith.constant 0 : i32
    %c0_i32_1 = arith.constant 0 : i32
    return %arg0, %c0_i32, %c0_i32_0 : i32, i32, i32
  }
  func.func @transform_3(%arg0: i32, %arg1: i32) -> (i32, i32) {
    %c0_i32 = arith.constant 0 : i32
    %c0_i32_0 = arith.constant 0 : i32
    %c0_i32_1 = arith.constant 0 : i32
    return %c0_i32, %c0_i32_0 : i32, i32
  }
  func.func @transform_4(%arg0: i32, %arg1: i32) -> (i32, i32) {
    %c0_i32 = arith.constant 0 : i32
    %c0_i32_0 = arith.constant 0 : i32
    %c0_i32_1 = arith.constant 0 : i32
    return %c0_i32, %c0_i32_0 : i32, i32
  }
  func.func @transform_5(%arg0: i32, %arg1: i32) -> (i32, i32, i32) {
    %c0_i32 = arith.constant 0 : i32
    %c0_i32_0 = arith.constant 0 : i32
    return %arg0, %arg1, %c0_i32 : i32, i32, i32
  }
}

module attributes {stable_mosaic.version = 11 : i64} {
  func.func @_mha_kernel(%arg0: i32, %arg1: i32, %arg2: i32, %arg3: memref<1x1x8x8xf32, #tpu.memory_space<vmem>>, %arg4: memref<1x1x8x8xf32, #tpu.memory_space<vmem>>, %arg5: memref<1x1x8x8xf32, #tpu.memory_space<vmem>>, %arg6: memref<1x1x8x8xf32, #tpu.memory_space<vmem>>) attributes {dimension_semantics = [#tpu.dimension_semantics<parallel>, #tpu.dimension_semantics<parallel>, #tpu.dimension_semantics<parallel>], iteration_bounds = array<i64: 2, 4, 1>, scalar_prefetch = 0 : i64, scratch_operands = 0 : i64, tpu.core_type = #tpu.core_type<tc>, window_params = [{transform_indices = @transform_0, window_bounds = array<i64: 1, 1, 8, 8>}, {transform_indices = @transform_1, window_bounds = array<i64: 1, 1, 8, 8>}, {transform_indices = @transform_2, window_bounds = array<i64: 1, 1, 8, 8>}, {transform_indices = @transform_3, window_bounds = array<i64: 1, 1, 8, 8>}]} {
    %c0 = arith.constant 0 : index
    %c0_0 = arith.constant 0 : index
    %c0_1 = arith.constant 0 : index
    %c0_2 = arith.constant 0 : index
    %0 = vector.load %arg3[%c0, %c0_0, %c0_1, %c0_2] : memref<1x1x8x8xf32, #tpu.memory_space<vmem>>, vector<1x1x8x8xf32>
    %1 = vector.shape_cast %0 : vector<1x1x8x8xf32> to vector<8x8xf32>
    %cst = arith.constant 0.353553385 : f32
    %2 = vector.broadcast %cst : f32 to vector<8x8xf32>
    %3 = arith.mulf %1, %2 : vector<8x8xf32>
    %c0_3 = arith.constant 0 : index
    %c0_4 = arith.constant 0 : index
    %c0_5 = arith.constant 0 : index
    %c0_6 = arith.constant 0 : index
    %4 = vector.load %arg4[%c0_3, %c0_4, %c0_5, %c0_6] : memref<1x1x8x8xf32, #tpu.memory_space<vmem>>, vector<1x1x8x8xf32>
    %5 = vector.shape_cast %4 : vector<1x1x8x8xf32> to vector<8x8xf32>
    %cst_7 = arith.constant dense<0.000000e+00> : vector<8x8xf32>
    %6 = tpu.matmul %3, %5, %cst_7 {dimension_numbers = #tpu.dot_dimension_numbers<[1], [1], [0], [0], [0, 0, 1, 0], [], []>} : vector<8x8xf32>, vector<8x8xf32>, vector<8x8xf32> -> vector<8x8xf32>
    %cst_8 = arith.constant dense<0xFF800000> : vector<8xf32>
    %7 = vector.multi_reduction <maximumf>, %6, %cst_8 [1] : vector<8x8xf32> to vector<8xf32>
    %8 = vector.shape_cast %7 : vector<8xf32> to vector<8x1xf32>
    %9 = vector.broadcast %8 : vector<8x1xf32> to vector<8x8xf32>
    %10 = arith.subf %6, %9 : vector<8x8xf32>
    %11 = math.exp %10 : vector<8x8xf32>
    %cst_9 = arith.constant dense<0.000000e+00> : vector<8xf32>
    %12 = vector.multi_reduction <add>, %11, %cst_9 [1] : vector<8x8xf32> to vector<8xf32>
    %13 = vector.shape_cast %12 : vector<8xf32> to vector<8x1xf32>
    %14 = vector.broadcast %13 : vector<8x1xf32> to vector<8x8xf32>
    %15 = arith.divf %11, %14 : vector<8x8xf32>
    %c0_10 = arith.constant 0 : index
    %c0_11 = arith.constant 0 : index
    %c0_12 = arith.constant 0 : index
    %c0_13 = arith.constant 0 : index
    %16 = vector.load %arg5[%c0_10, %c0_11, %c0_12, %c0_13] : memref<1x1x8x8xf32, #tpu.memory_space<vmem>>, vector<1x1x8x8xf32>
    %17 = vector.shape_cast %16 : vector<1x1x8x8xf32> to vector<8x8xf32>
    %cst_14 = arith.constant dense<0.000000e+00> : vector<8x8xf32>
    %18 = tpu.matmul %15, %17, %cst_14 {dimension_numbers = #tpu.dot_dimension_numbers<[1], [0], [0], [1], [0, 0, 1, 1], [], []>} : vector<8x8xf32>, vector<8x8xf32>, vector<8x8xf32> -> vector<8x8xf32>
    %c0_15 = arith.constant 0 : index
    %c0_16 = arith.constant 0 : index
    %c0_17 = arith.constant 0 : index
    %c0_18 = arith.constant 0 : index
    %19 = vector.load %arg6[%c0_15, %c0_16, %c0_17, %c0_18] : memref<1x1x8x8xf32, #tpu.memory_space<vmem>>, vector<1x1x8x8xf32>
    %20 = vector.shape_cast %19 : vector<1x1x8x8xf32> to vector<8x8xf32>
    %21 = vector.shape_cast %18 : vector<8x8xf32> to vector<1x1x8x8xf32>
    tpu.vector_store %arg6[%c0_15, %c0_16, %c0_17, %c0_18], %21 {strides = array<i32>} : memref<1x1x8x8xf32, #tpu.memory_space<vmem>>, vector<1x1x8x8xf32>,
    return
  }
  func.func @transform_0(%arg0: i32, %arg1: i32, %arg2: i32) -> (i32, i32, i32, i32) {
    %c0_i32 = arith.constant 0 : i32
    %c0_i32_0 = arith.constant 0 : i32
    return %arg0, %arg1, %arg2, %c0_i32 : i32, i32, i32, i32
  }
  func.func @transform_1(%arg0: i32, %arg1: i32, %arg2: i32) -> (i32, i32, i32, i32) {
    %c0_i32 = arith.constant 0 : i32
    %c0_i32_0 = arith.constant 0 : i32
    %c0_i32_1 = arith.constant 0 : i32
    return %arg0, %arg1, %c0_i32, %c0_i32_0 : i32, i32, i32, i32
  }
  func.func @transform_2(%arg0: i32, %arg1: i32, %arg2: i32) -> (i32, i32, i32, i32) {
    %c0_i32 = arith.constant 0 : i32
    %c0_i32_0 = arith.constant 0 : i32
    %c0_i32_1 = arith.constant 0 : i32
    return %arg0, %arg1, %c0_i32, %c0_i32_0 : i32, i32, i32, i32
  }
  func.func @transform_3(%arg0: i32, %arg1: i32, %arg2: i32) -> (i32, i32, i32, i32) {
    %c0_i32 = arith.constant 0 : i32
    %c0_i32_0 = arith.constant 0 : i32
    return %arg0, %arg1, %arg2, %c0_i32 : i32, i32, i32, i32
  }
}

module attributes {stable_mosaic.version = 11 : i64} {
  func.func @_linear_gate_res_kernel(%arg0: i32, %arg1: i32, %arg2: memref<1x8x32xf32, #tpu.memory_space<vmem>>, %arg3: memref<1x8x32xf32, #tpu.memory_space<vmem>>, %arg4: memref<1x1x32xf32, #tpu.memory_space<vmem>>, %arg5: memref<32x32xf32, #tpu.memory_space<vmem>>, %arg6: memref<1x32xf32, #tpu.memory_space<vmem>>, %arg7: memref<1x8x32xf32, #tpu.memory_space<vmem>>) attributes {dimension_semantics = [#tpu.dimension_semantics<parallel>, #tpu.dimension_semantics<parallel>], iteration_bounds = array<i64: 2, 1>, scalar_prefetch = 0 : i64, scratch_operands = 0 : i64, tpu.core_type = #tpu.core_type<tc>, window_params = [{transform_indices = @transform_0, window_bounds = array<i64: 1, 8, 32>}, {transform_indices = @transform_1, window_bounds = array<i64: 1, 8, 32>}, {transform_indices = @transform_2, window_bounds = array<i64: 1, 1, 32>}, {pipeline_mode = #tpu.pipeline_mode<synchronous>, transform_indices = @transform_3, window_bounds = array<i64: 32, 32>}, {pipeline_mode = #tpu.pipeline_mode<synchronous>, transform_indices = @transform_4, window_bounds = array<i64: 1, 32>}, {transform_indices = @transform_5, window_bounds = array<i64: 1, 8, 32>}]} {
    %c0 = arith.constant 0 : index
    %c0_0 = arith.constant 0 : index
    %c0_1 = arith.constant 0 : index
    %0 = vector.load %arg2[%c0, %c0_0, %c0_1] : memref<1x8x32xf32, #tpu.memory_space<vmem>>, vector<1x8x32xf32>
    %1 = vector.shape_cast %0 : vector<1x8x32xf32> to vector<8x32xf32>
    %c0_2 = arith.constant 0 : index
    %c0_3 = arith.constant 0 : index
    %2 = vector.load %arg5[%c0_2, %c0_3] : memref<32x32xf32, #tpu.memory_space<vmem>>, vector<32x32xf32>
    %cst = arith.constant dense<0.000000e+00> : vector<8x32xf32>
    %3 = tpu.matmul %1, %2, %cst {dimension_numbers = #tpu.dot_dimension_numbers<[1], [0], [0], [1], [0, 0, 1, 1], [], []>} : vector<8x32xf32>, vector<32x32xf32>, vector<8x32xf32> -> vector<8x32xf32>
    %c0_4 = arith.constant 0 : index
    %c0_5 = arith.constant 0 : index
    %4 = vector.load %arg6[%c0_4, %c0_5] : memref<1x32xf32, #tpu.memory_space<vmem>>, vector<1x32xf32>
    %5 = vector.broadcast %4 : vector<1x32xf32> to vector<8x32xf32>
    %6 = arith.addf %3, %5 : vector<8x32xf32>
    %c0_6 = arith.constant 0 : index
    %c0_7 = arith.constant 0 : index
    %c0_8 = arith.constant 0 : index
    %7 = vector.load %arg3[%c0_6, %c0_7, %c0_8] : memref<1x8x32xf32, #tpu.memory_space<vmem>>, vector<1x8x32xf32>
    %8 = vector.shape_cast %7 : vector<1x8x32xf32> to vector<8x32xf32>
    %c0_9 = arith.constant 0 : index
    %c0_10 = arith.constant 0 : index
    %c0_11 = arith.constant 0 : index
    %9 = vector.load %arg4[%c0_9, %c0_10, %c0_11] : memref<1x1x32xf32, #tpu.memory_space<vmem>>, vector<1x1x32xf32>
    %10 = vector.shape_cast %9 : vector<1x1x32xf32> to vector<1x32xf32>
    %11 = vector.broadcast %10 : vector<1x32xf32> to vector<8x32xf32>
    %12 = arith.mulf %11, %6 : vector<8x32xf32>
    %13 = arith.addf %8, %12 : vector<8x32xf32>
    %c0_12 = arith.constant 0 : index
    %c0_13 = arith.constant 0 : index
    %c0_14 = arith.constant 0 : index
    %14 = vector.load %arg7[%c0_12, %c0_13, %c0_14] : memref<1x8x32xf32, #tpu.memory_space<vmem>>, vector<1x8x32xf32>
    %15 = vector.shape_cast %14 : vector<1x8x32xf32> to vector<8x32xf32>
    %16 = vector.shape_cast %13 : vector<8x32xf32> to vector<1x8x32xf32>
    tpu.vector_store %arg7[%c0_12, %c0_13, %c0_14], %16 {strides = array<i32>} : memref<1x8x32xf32, #tpu.memory_space<vmem>>, vector<1x8x32xf32>,
    return
  }
  func.func @transform_0(%arg0: i32, %arg1: i32) -> (i32, i32, i32) {
    %c0_i32 = arith.constant 0 : i32
    %c0_i32_0 = arith.constant 0 : i32
    return %arg0, %arg1, %c0_i32 : i32, i32, i32
  }
  func.func @transform_1(%arg0: i32, %arg1: i32) -> (i32, i32, i32) {
    %c0_i32 = arith.constant 0 : i32
    %c0_i32_0 = arith.constant 0 : i32
    return %arg0, %arg1, %c0_i32 : i32, i32, i32
  }
  func.func @transform_2(%arg0: i32, %arg1: i32) -> (i32, i32, i32) {
    %c0_i32 = arith.constant 0 : i32
    %c0_i32_0 = arith.constant 0 : i32
    %c0_i32_1 = arith.constant 0 : i32
    return %arg0, %c0_i32, %c0_i32_0 : i32, i32, i32
  }
  func.func @transform_3(%arg0: i32, %arg1: i32) -> (i32, i32) {
    %c0_i32 = arith.constant 0 : i32
    %c0_i32_0 = arith.constant 0 : i32
    %c0_i32_1 = arith.constant 0 : i32
    return %c0_i32, %c0_i32_0 : i32, i32
  }
  func.func @transform_4(%arg0: i32, %arg1: i32) -> (i32, i32) {
    %c0_i32 = arith.constant 0 : i32
    %c0_i32_0 = arith.constant 0 : i32
    %c0_i32_1 = arith.constant 0 : i32
    return %c0_i32, %c0_i32_0 : i32, i32
  }
  func.func @transform_5(%arg0: i32, %arg1: i32) -> (i32, i32, i32) {
    %c0_i32 = arith.constant 0 : i32
    %c0_i32_0 = arith.constant 0 : i32
    return %arg0, %arg1, %c0_i32 : i32, i32, i32
  }
}

module attributes {stable_mosaic.version = 11 : i64} {
  func.func @_ln_mod_linear_kernel(%arg0: i32, %arg1: i32, %arg2: memref<1x8x32xf32, #tpu.memory_space<vmem>>, %arg3: memref<1x1x32xf32, #tpu.memory_space<vmem>>, %arg4: memref<1x1x32xf32, #tpu.memory_space<vmem>>, %arg5: memref<32x32xf32, #tpu.memory_space<vmem>>, %arg6: memref<1x32xf32, #tpu.memory_space<vmem>>, %arg7: memref<1x8x32xf32, #tpu.memory_space<vmem>>) attributes {dimension_semantics = [#tpu.dimension_semantics<parallel>, #tpu.dimension_semantics<parallel>], iteration_bounds = array<i64: 2, 1>, scalar_prefetch = 0 : i64, scratch_operands = 0 : i64, tpu.core_type = #tpu.core_type<tc>, window_params = [{transform_indices = @transform_0, window_bounds = array<i64: 1, 8, 32>}, {transform_indices = @transform_1, window_bounds = array<i64: 1, 1, 32>}, {transform_indices = @transform_2, window_bounds = array<i64: 1, 1, 32>}, {pipeline_mode = #tpu.pipeline_mode<synchronous>, transform_indices = @transform_3, window_bounds = array<i64: 32, 32>}, {pipeline_mode = #tpu.pipeline_mode<synchronous>, transform_indices = @transform_4, window_bounds = array<i64: 1, 32>}, {transform_indices = @transform_5, window_bounds = array<i64: 1, 8, 32>}]} {
    %c0 = arith.constant 0 : index
    %c0_0 = arith.constant 0 : index
    %c0_1 = arith.constant 0 : index
    %0 = vector.load %arg2[%c0, %c0_0, %c0_1] : memref<1x8x32xf32, #tpu.memory_space<vmem>>, vector<1x8x32xf32>
    %1 = vector.shape_cast %0 : vector<1x8x32xf32> to vector<8x32xf32>
    %c0_2 = arith.constant 0 : index
    %c0_3 = arith.constant 0 : index
    %c0_4 = arith.constant 0 : index
    %2 = vector.load %arg3[%c0_2, %c0_3, %c0_4] : memref<1x1x32xf32, #tpu.memory_space<vmem>>, vector<1x1x32xf32>
    %3 = vector.shape_cast %2 : vector<1x1x32xf32> to vector<1x32xf32>
    %c0_5 = arith.constant 0 : index
    %c0_6 = arith.constant 0 : index
    %c0_7 = arith.constant 0 : index
    %4 = vector.load %arg4[%c0_5, %c0_6, %c0_7] : memref<1x1x32xf32, #tpu.memory_space<vmem>>, vector<1x1x32xf32>
    %5 = vector.shape_cast %4 : vector<1x1x32xf32> to vector<1x32xf32>
    %cst = arith.constant dense<0.000000e+00> : vector<8xf32>
    %6 = vector.multi_reduction <add>, %1, %cst [1] : vector<8x32xf32> to vector<8xf32>
    %7 = vector.shape_cast %6 : vector<8xf32> to vector<8x1xf32>
    %cst_8 = arith.constant 3.200000e+01 : f32
    %8 = vector.broadcast %cst_8 : f32 to vector<8x1xf32>
    %9 = arith.divf %7, %8 : vector<8x1xf32>
    %10 = vector.broadcast %9 : vector<8x1xf32> to vector<8x32xf32>
    %11 = arith.subf %1, %10 : vector<8x32xf32>
    %12 = arith.mulf %11, %11 : vector<8x32xf32>
    %cst_9 = arith.constant dense<0.000000e+00> : vector<8xf32>
    %13 = vector.multi_reduction <add>, %12, %cst_9 [1] : vector<8x32xf32> to vector<8xf32>
    %14 = vector.shape_cast %13 : vector<8xf32> to vector<8x1xf32>
    %cst_10 = arith.constant 3.200000e+01 : f32
    %15 = vector.broadcast %cst_10 : f32 to vector<8x1xf32>
    %16 = arith.divf %14, %15 : vector<8x1xf32>
    %cst_11 = arith.constant 9.99999997E-7 : f32
    %17 = vector.broadcast %cst_11 : f32 to vector<8x1xf32>
    %18 = arith.addf %16, %17 : vector<8x1xf32>
    %19 = math.rsqrt %18 : vector<8x1xf32>
    %20 = vector.broadcast %19 : vector<8x1xf32> to vector<8x32xf32>
    %21 = arith.mulf %11, %20 : vector<8x32xf32>
    %cst_12 = arith.constant 1.000000e+00 : f32
    %22 = vector.broadcast %cst_12 : f32 to vector<1x32xf32>
    %23 = arith.addf %22, %5 : vector<1x32xf32>
    %24 = vector.broadcast %23 : vector<1x32xf32> to vector<8x32xf32>
    %25 = arith.mulf %21, %24 : vector<8x32xf32>
    %26 = vector.broadcast %3 : vector<1x32xf32> to vector<8x32xf32>
    %27 = arith.addf %25, %26 : vector<8x32xf32>
    %c0_13 = arith.constant 0 : index
    %c0_14 = arith.constant 0 : index
    %28 = vector.load %arg5[%c0_13, %c0_14] : memref<32x32xf32, #tpu.memory_space<vmem>>, vector<32x32xf32>
    %cst_15 = arith.constant dense<0.000000e+00> : vector<8x32xf32>
    %29 = tpu.matmul %27, %28, %cst_15 {dimension_numbers = #tpu.dot_dimension_numbers<[1], [0], [0], [1], [0, 0, 1, 1], [], []>} : vector<8x32xf32>, vector<32x32xf32>, vector<8x32xf32> -> vector<8x32xf32>
    %c0_16 = arith.constant 0 : index
    %c0_17 = arith.constant 0 : index
    %30 = vector.load %arg6[%c0_16, %c0_17] : memref<1x32xf32, #tpu.memory_space<vmem>>, vector<1x32xf32>
    %31 = vector.broadcast %30 : vector<1x32xf32> to vector<8x32xf32>
    %32 = arith.addf %29, %31 : vector<8x32xf32>
    %c0_18 = arith.constant 0 : index
    %c0_19 = arith.constant 0 : index
    %c0_20 = arith.constant 0 : index
    %33 = vector.load %arg7[%c0_18, %c0_19, %c0_20] : memref<1x8x32xf32, #tpu.memory_space<vmem>>, vector<1x8x32xf32>
    %34 = vector.shape_cast %33 : vector<1x8x32xf32> to vector<8x32xf32>
    %35 = vector.shape_cast %32 : vector<8x32xf32> to vector<1x8x32xf32>
    tpu.vector_store %arg7[%c0_18, %c0_19, %c0_20], %35 {strides = array<i32>} : memref<1x8x32xf32, #tpu.memory_space<vmem>>, vector<1x8x32xf32>,
    return
  }
  func.func @transform_0(%arg0: i32, %arg1: i32) -> (i32, i32, i32) {
    %c0_i32 = arith.constant 0 : i32
    %c0_i32_0 = arith.constant 0 : i32
    return %arg0, %arg1, %c0_i32 : i32, i32, i32
  }
  func.func @transform_1(%arg0: i32, %arg1: i32) -> (i32, i32, i32) {
    %c0_i32 = arith.constant 0 : i32
    %c0_i32_0 = arith.constant 0 : i32
    %c0_i32_1 = arith.constant 0 : i32
    return %arg0, %c0_i32, %c0_i32_0 : i32, i32, i32
  }
  func.func @transform_2(%arg0: i32, %arg1: i32) -> (i32, i32, i32) {
    %c0_i32 = arith.constant 0 : i32
    %c0_i32_0 = arith.constant 0 : i32
    %c0_i32_1 = arith.constant 0 : i32
    return %arg0, %c0_i32, %c0_i32_0 : i32, i32, i32
  }
  func.func @transform_3(%arg0: i32, %arg1: i32) -> (i32, i32) {
    %c0_i32 = arith.constant 0 : i32
    %c0_i32_0 = arith.constant 0 : i32
    %c0_i32_1 = arith.constant 0 : i32
    return %c0_i32, %c0_i32_0 : i32, i32
  }
  func.func @transform_4(%arg0: i32, %arg1: i32) -> (i32, i32) {
    %c0_i32 = arith.constant 0 : i32
    %c0_i32_0 = arith.constant 0 : i32
    %c0_i32_1 = arith.constant 0 : i32
    return %c0_i32, %c0_i32_0 : i32, i32
  }
  func.func @transform_5(%arg0: i32, %arg1: i32) -> (i32, i32, i32) {
    %c0_i32 = arith.constant 0 : i32
    %c0_i32_0 = arith.constant 0 : i32
    return %arg0, %arg1, %c0_i32 : i32, i32, i32
  }
}

module attributes {stable_mosaic.version = 11 : i64} {
  func.func @_ln_mod_linear_kernel(%arg0: i32, %arg1: i32, %arg2: memref<1x8x32xf32, #tpu.memory_space<vmem>>, %arg3: memref<1x1x32xf32, #tpu.memory_space<vmem>>, %arg4: memref<1x1x32xf32, #tpu.memory_space<vmem>>, %arg5: memref<32x64xf32, #tpu.memory_space<vmem>>, %arg6: memref<1x64xf32, #tpu.memory_space<vmem>>, %arg7: memref<1x8x64xf32, #tpu.memory_space<vmem>>) attributes {dimension_semantics = [#tpu.dimension_semantics<parallel>, #tpu.dimension_semantics<parallel>], iteration_bounds = array<i64: 2, 1>, scalar_prefetch = 0 : i64, scratch_operands = 0 : i64, tpu.core_type = #tpu.core_type<tc>, window_params = [{transform_indices = @transform_0, window_bounds = array<i64: 1, 8, 32>}, {transform_indices = @transform_1, window_bounds = array<i64: 1, 1, 32>}, {transform_indices = @transform_2, window_bounds = array<i64: 1, 1, 32>}, {pipeline_mode = #tpu.pipeline_mode<synchronous>, transform_indices = @transform_3, window_bounds = array<i64: 32, 64>}, {pipeline_mode = #tpu.pipeline_mode<synchronous>, transform_indices = @transform_4, window_bounds = array<i64: 1, 64>}, {transform_indices = @transform_5, window_bounds = array<i64: 1, 8, 64>}]} {
    %c0 = arith.constant 0 : index
    %c0_0 = arith.constant 0 : index
    %c0_1 = arith.constant 0 : index
    %0 = vector.load %arg2[%c0, %c0_0, %c0_1] : memref<1x8x32xf32, #tpu.memory_space<vmem>>, vector<1x8x32xf32>
    %1 = vector.shape_cast %0 : vector<1x8x32xf32> to vector<8x32xf32>
    %c0_2 = arith.constant 0 : index
    %c0_3 = arith.constant 0 : index
    %c0_4 = arith.constant 0 : index
    %2 = vector.load %arg3[%c0_2, %c0_3, %c0_4] : memref<1x1x32xf32, #tpu.memory_space<vmem>>, vector<1x1x32xf32>
    %3 = vector.shape_cast %2 : vector<1x1x32xf32> to vector<1x32xf32>
    %c0_5 = arith.constant 0 : index
    %c0_6 = arith.constant 0 : index
    %c0_7 = arith.constant 0 : index
    %4 = vector.load %arg4[%c0_5, %c0_6, %c0_7] : memref<1x1x32xf32, #tpu.memory_space<vmem>>, vector<1x1x32xf32>
    %5 = vector.shape_cast %4 : vector<1x1x32xf32> to vector<1x32xf32>
    %cst = arith.constant dense<0.000000e+00> : vector<8xf32>
    %6 = vector.multi_reduction <add>, %1, %cst [1] : vector<8x32xf32> to vector<8xf32>
    %7 = vector.shape_cast %6 : vector<8xf32> to vector<8x1xf32>
    %cst_8 = arith.constant 3.200000e+01 : f32
    %8 = vector.broadcast %cst_8 : f32 to vector<8x1xf32>
    %9 = arith.divf %7, %8 : vector<8x1xf32>
    %10 = vector.broadcast %9 : vector<8x1xf32> to vector<8x32xf32>
    %11 = arith.subf %1, %10 : vector<8x32xf32>
    %12 = arith.mulf %11, %11 : vector<8x32xf32>
    %cst_9 = arith.constant dense<0.000000e+00> : vector<8xf32>
    %13 = vector.multi_reduction <add>, %12, %cst_9 [1] : vector<8x32xf32> to vector<8xf32>
    %14 = vector.shape_cast %13 : vector<8xf32> to vector<8x1xf32>
    %cst_10 = arith.constant 3.200000e+01 : f32
    %15 = vector.broadcast %cst_10 : f32 to vector<8x1xf32>
    %16 = arith.divf %14, %15 : vector<8x1xf32>
    %cst_11 = arith.constant 9.99999997E-7 : f32
    %17 = vector.broadcast %cst_11 : f32 to vector<8x1xf32>
    %18 = arith.addf %16, %17 : vector<8x1xf32>
    %19 = math.rsqrt %18 : vector<8x1xf32>
    %20 = vector.broadcast %19 : vector<8x1xf32> to vector<8x32xf32>
    %21 = arith.mulf %11, %20 : vector<8x32xf32>
    %cst_12 = arith.constant 1.000000e+00 : f32
    %22 = vector.broadcast %cst_12 : f32 to vector<1x32xf32>
    %23 = arith.addf %22, %5 : vector<1x32xf32>
    %24 = vector.broadcast %23 : vector<1x32xf32> to vector<8x32xf32>
    %25 = arith.mulf %21, %24 : vector<8x32xf32>
    %26 = vector.broadcast %3 : vector<1x32xf32> to vector<8x32xf32>
    %27 = arith.addf %25, %26 : vector<8x32xf32>
    %c0_13 = arith.constant 0 : index
    %c0_14 = arith.constant 0 : index
    %28 = vector.load %arg5[%c0_13, %c0_14] : memref<32x64xf32, #tpu.memory_space<vmem>>, vector<32x64xf32>
    %cst_15 = arith.constant dense<0.000000e+00> : vector<8x64xf32>
    %29 = tpu.matmul %27, %28, %cst_15 {dimension_numbers = #tpu.dot_dimension_numbers<[1], [0], [0], [1], [0, 0, 1, 1], [], []>} : vector<8x32xf32>, vector<32x64xf32>, vector<8x64xf32> -> vector<8x64xf32>
    %c0_16 = arith.constant 0 : index
    %c0_17 = arith.constant 0 : index
    %30 = vector.load %arg6[%c0_16, %c0_17] : memref<1x64xf32, #tpu.memory_space<vmem>>, vector<1x64xf32>
    %31 = vector.broadcast %30 : vector<1x64xf32> to vector<8x64xf32>
    %32 = arith.addf %29, %31 : vector<8x64xf32>
    %c0_18 = arith.constant 0 : index
    %c0_19 = arith.constant 0 : index
    %c0_20 = arith.constant 0 : index
    %33 = vector.load %arg7[%c0_18, %c0_19, %c0_20] : memref<1x8x64xf32, #tpu.memory_space<vmem>>, vector<1x8x64xf32>
    %34 = vector.shape_cast %33 : vector<1x8x64xf32> to vector<8x64xf32>
    %35 = vector.shape_cast %32 : vector<8x64xf32> to vector<1x8x64xf32>
    tpu.vector_store %arg7[%c0_18, %c0_19, %c0_20], %35 {strides = array<i32>} : memref<1x8x64xf32, #tpu.memory_space<vmem>>, vector<1x8x64xf32>,
    return
  }
  func.func @transform_0(%arg0: i32, %arg1: i32) -> (i32, i32, i32) {
    %c0_i32 = arith.constant 0 : i32
    %c0_i32_0 = arith.constant 0 : i32
    return %arg0, %arg1, %c0_i32 : i32, i32, i32
  }
  func.func @transform_1(%arg0: i32, %arg1: i32) -> (i32, i32, i32) {
    %c0_i32 = arith.constant 0 : i32
    %c0_i32_0 = arith.constant 0 : i32
    %c0_i32_1 = arith.constant 0 : i32
    return %arg0, %c0_i32, %c0_i32_0 : i32, i32, i32
  }
  func.func @transform_2(%arg0: i32, %arg1: i32) -> (i32, i32, i32) {
    %c0_i32 = arith.constant 0 : i32
    %c0_i32_0 = arith.constant 0 : i32
    %c0_i32_1 = arith.constant 0 : i32
    return %arg0, %c0_i32, %c0_i32_0 : i32, i32, i32
  }
  func.func @transform_3(%arg0: i32, %arg1: i32) -> (i32, i32) {
    %c0_i32 = arith.constant 0 : i32
    %c0_i32_0 = arith.constant 0 : i32
    %c0_i32_1 = arith.constant 0 : i32
    return %c0_i32, %c0_i32_0 : i32, i32
  }
  func.func @transform_4(%arg0: i32, %arg1: i32) -> (i32, i32) {
    %c0_i32 = arith.constant 0 : i32
    %c0_i32_0 = arith.constant 0 : i32
    %c0_i32_1 = arith.constant 0 : i32
    return %c0_i32, %c0_i32_0 : i32, i32
  }
  func.func @transform_5(%arg0: i32, %arg1: i32) -> (i32, i32, i32) {
    %c0_i32 = arith.constant 0 : i32
    %c0_i32_0 = arith.constant 0 : i32
    return %arg0, %arg1, %c0_i32 : i32, i32, i32
  }
}

module attributes {stable_mosaic.version = 11 : i64} {
  func.func @_mlp_kernel(%arg0: i32, %arg1: i32, %arg2: memref<1x8x32xf32, #tpu.memory_space<vmem>>, %arg3: memref<1x1x32xf32, #tpu.memory_space<vmem>>, %arg4: memref<1x1x32xf32, #tpu.memory_space<vmem>>, %arg5: memref<1x1x32xf32, #tpu.memory_space<vmem>>, %arg6: memref<32x128xf32, #tpu.memory_space<vmem>>, %arg7: memref<1x128xf32, #tpu.memory_space<vmem>>, %arg8: memref<128x32xf32, #tpu.memory_space<vmem>>, %arg9: memref<1x32xf32, #tpu.memory_space<vmem>>, %arg10: memref<1x8x32xf32, #tpu.memory_space<vmem>>) attributes {dimension_semantics = [#tpu.dimension_semantics<parallel>, #tpu.dimension_semantics<parallel>], iteration_bounds = array<i64: 2, 1>, scalar_prefetch = 0 : i64, scratch_operands = 0 : i64, tpu.core_type = #tpu.core_type<tc>, window_params = [{transform_indices = @transform_0, window_bounds = array<i64: 1, 8, 32>}, {transform_indices = @transform_1, window_bounds = array<i64: 1, 1, 32>}, {transform_indices = @transform_2, window_bounds = array<i64: 1, 1, 32>}, {transform_indices = @transform_3, window_bounds = array<i64: 1, 1, 32>}, {pipeline_mode = #tpu.pipeline_mode<synchronous>, transform_indices = @transform_4, window_bounds = array<i64: 32, 128>}, {pipeline_mode = #tpu.pipeline_mode<synchronous>, transform_indices = @transform_5, window_bounds = array<i64: 1, 128>}, {pipeline_mode = #tpu.pipeline_mode<synchronous>, transform_indices = @transform_6, window_bounds = array<i64: 128, 32>}, {pipeline_mode = #tpu.pipeline_mode<synchronous>, transform_indices = @transform_7, window_bounds = array<i64: 1, 32>}, {transform_indices = @transform_8, window_bounds = array<i64: 1, 8, 32>}]} {
    %c0 = arith.constant 0 : index
    %c0_0 = arith.constant 0 : index
    %c0_1 = arith.constant 0 : index
    %0 = vector.load %arg2[%c0, %c0_0, %c0_1] : memref<1x8x32xf32, #tpu.memory_space<vmem>>, vector<1x8x32xf32>
    %1 = vector.shape_cast %0 : vector<1x8x32xf32> to vector<8x32xf32>
    %c0_2 = arith.constant 0 : index
    %c0_3 = arith.constant 0 : index
    %c0_4 = arith.constant 0 : index
    %2 = vector.load %arg3[%c0_2, %c0_3, %c0_4] : memref<1x1x32xf32, #tpu.memory_space<vmem>>, vector<1x1x32xf32>
    %3 = vector.shape_cast %2 : vector<1x1x32xf32> to vector<1x32xf32>
    %c0_5 = arith.constant 0 : index
    %c0_6 = arith.constant 0 : index
    %c0_7 = arith.constant 0 : index
    %4 = vector.load %arg4[%c0_5, %c0_6, %c0_7] : memref<1x1x32xf32, #tpu.memory_space<vmem>>, vector<1x1x32xf32>
    %5 = vector.shape_cast %4 : vector<1x1x32xf32> to vector<1x32xf32>
    %cst = arith.constant dense<0.000000e+00> : vector<8xf32>
    %6 = vector.multi_reduction <add>, %1, %cst [1] : vector<8x32xf32> to vector<8xf32>
    %7 = vector.shape_cast %6 : vector<8xf32> to vector<8x1xf32>
    %cst_8 = arith.constant 3.200000e+01 : f32
    %8 = vector.broadcast %cst_8 : f32 to vector<8x1xf32>
    %9 = arith.divf %7, %8 : vector<8x1xf32>
    %10 = vector.broadcast %9 : vector<8x1xf32> to vector<8x32xf32>
    %11 = arith.subf %1, %10 : vector<8x32xf32>
    %12 = arith.mulf %11, %11 : vector<8x32xf32>
    %cst_9 = arith.constant dense<0.000000e+00> : vector<8xf32>
    %13 = vector.multi_reduction <add>, %12, %cst_9 [1] : vector<8x32xf32> to vector<8xf32>
    %14 = vector.shape_cast %13 : vector<8xf32> to vector<8x1xf32>
    %cst_10 = arith.constant 3.200000e+01 : f32
    %15 = vector.broadcast %cst_10 : f32 to vector<8x1xf32>
    %16 = arith.divf %14, %15 : vector<8x1xf32>
    %cst_11 = arith.constant 9.99999997E-7 : f32
    %17 = vector.broadcast %cst_11 : f32 to vector<8x1xf32>
    %18 = arith.addf %16, %17 : vector<8x1xf32>
    %19 = math.rsqrt %18 : vector<8x1xf32>
    %20 = vector.broadcast %19 : vector<8x1xf32> to vector<8x32xf32>
    %21 = arith.mulf %11, %20 : vector<8x32xf32>
    %cst_12 = arith.constant 1.000000e+00 : f32
    %22 = vector.broadcast %cst_12 : f32 to vector<1x32xf32>
    %23 = arith.addf %22, %5 : vector<1x32xf32>
    %24 = vector.broadcast %23 : vector<1x32xf32> to vector<8x32xf32>
    %25 = arith.mulf %21, %24 : vector<8x32xf32>
    %26 = vector.broadcast %3 : vector<1x32xf32> to vector<8x32xf32>
    %27 = arith.addf %25, %26 : vector<8x32xf32>
    %c0_13 = arith.constant 0 : index
    %c0_14 = arith.constant 0 : index
    %28 = vector.load %arg6[%c0_13, %c0_14] : memref<32x128xf32, #tpu.memory_space<vmem>>, vector<32x128xf32>
    %cst_15 = arith.constant dense<0.000000e+00> : vector<8x128xf32>
    %29 = tpu.matmul %27, %28, %cst_15 {dimension_numbers = #tpu.dot_dimension_numbers<[1], [0], [0], [1], [0, 0, 1, 1], [], []>} : vector<8x32xf32>, vector<32x128xf32>, vector<8x128xf32> -> vector<8x128xf32>
    %c0_16 = arith.constant 0 : index
    %c0_17 = arith.constant 0 : index
    %30 = vector.load %arg7[%c0_16, %c0_17] : memref<1x128xf32, #tpu.memory_space<vmem>>, vector<1x128xf32>
    %31 = vector.broadcast %30 : vector<1x128xf32> to vector<8x128xf32>
    %32 = arith.addf %29, %31 : vector<8x128xf32>
    %33 = arith.mulf %32, %32 : vector<8x128xf32>
    %34 = arith.mulf %32, %33 : vector<8x128xf32>
    %cst_18 = arith.constant 4.471500e-02 : f32
    %35 = vector.broadcast %cst_18 : f32 to vector<8x128xf32>
    %36 = arith.mulf %35, %34 : vector<8x128xf32>
    %37 = arith.addf %32, %36 : vector<8x128xf32>
    %cst_19 = arith.constant 0.797884583 : f32
    %38 = vector.broadcast %cst_19 : f32 to vector<8x128xf32>
    %39 = arith.mulf %38, %37 : vector<8x128xf32>
    %40 = math.tanh %39 : vector<8x128xf32>
    %cst_20 = arith.constant 1.000000e+00 : f32
    %41 = vector.broadcast %cst_20 : f32 to vector<8x128xf32>
    %42 = arith.addf %41, %40 : vector<8x128xf32>
    %cst_21 = arith.constant 5.000000e-01 : f32
    %43 = vector.broadcast %cst_21 : f32 to vector<8x128xf32>
    %44 = arith.mulf %43, %42 : vector<8x128xf32>
    %45 = arith.mulf %32, %44 : vector<8x128xf32>
    %c0_22 = arith.constant 0 : index
    %c0_23 = arith.constant 0 : index
    %46 = vector.load %arg8[%c0_22, %c0_23] : memref<128x32xf32, #tpu.memory_space<vmem>>, vector<128x32xf32>
    %cst_24 = arith.constant dense<0.000000e+00> : vector<8x32xf32>
    %47 = tpu.matmul %45, %46, %cst_24 {dimension_numbers = #tpu.dot_dimension_numbers<[1], [0], [0], [1], [0, 0, 1, 1], [], []>} : vector<8x128xf32>, vector<128x32xf32>, vector<8x32xf32> -> vector<8x32xf32>
    %c0_25 = arith.constant 0 : index
    %c0_26 = arith.constant 0 : index
    %48 = vector.load %arg9[%c0_25, %c0_26] : memref<1x32xf32, #tpu.memory_space<vmem>>, vector<1x32xf32>
    %49 = vector.broadcast %48 : vector<1x32xf32> to vector<8x32xf32>
    %50 = arith.addf %47, %49 : vector<8x32xf32>
    %c0_27 = arith.constant 0 : index
    %c0_28 = arith.constant 0 : index
    %c0_29 = arith.constant 0 : index
    %51 = vector.load %arg5[%c0_27, %c0_28, %c0_29] : memref<1x1x32xf32, #tpu.memory_space<vmem>>, vector<1x1x32xf32>
    %52 = vector.shape_cast %51 : vector<1x1x32xf32> to vector<1x32xf32>
    %53 = vector.broadcast %52 : vector<1x32xf32> to vector<8x32xf32>
    %54 = arith.mulf %53, %50 : vector<8x32xf32>
    %55 = arith.addf %1, %54 : vector<8x32xf32>
    %c0_30 = arith.constant 0 : index
    %c0_31 = arith.constant 0 : index
    %c0_32 = arith.constant 0 : index
    %56 = vector.load %arg10[%c0_30, %c0_31, %c0_32] : memref<1x8x32xf32, #tpu.memory_space<vmem>>, vector<1x8x32xf32>
    %57 = vector.shape_cast %56 : vector<1x8x32xf32> to vector<8x32xf32>
    %58 = vector.shape_cast %55 : vector<8x32xf32> to vector<1x8x32xf32>
    tpu.vector_store %arg10[%c0_30, %c0_31, %c0_32], %58 {strides = array<i32>} : memref<1x8x32xf32, #tpu.memory_space<vmem>>, vector<1x8x32xf32>,
    return
  }
  func.func @transform_0(%arg0: i32, %arg1: i32) -> (i32, i32, i32) {
    %c0_i32 = arith.constant 0 : i32
    %c0_i32_0 = arith.constant 0 : i32
    return %arg0, %arg1, %c0_i32 : i32, i32, i32
  }
  func.func @transform_1(%arg0: i32, %arg1: i32) -> (i32, i32, i32) {
    %c0_i32 = arith.constant 0 : i32
    %c0_i32_0 = arith.constant 0 : i32
    %c0_i32_1 = arith.constant 0 : i32
    return %arg0, %c0_i32, %c0_i32_0 : i32, i32, i32
  }
  func.func @transform_2(%arg0: i32, %arg1: i32) -> (i32, i32, i32) {
    %c0_i32 = arith.constant 0 : i32
    %c0_i32_0 = arith.constant 0 : i32
    %c0_i32_1 = arith.constant 0 : i32
    return %arg0, %c0_i32, %c0_i32_0 : i32, i32, i32
  }
  func.func @transform_3(%arg0: i32, %arg1: i32) -> (i32, i32, i32) {
    %c0_i32 = arith.constant 0 : i32
    %c0_i32_0 = arith.constant 0 : i32
    %c0_i32_1 = arith.constant 0 : i32
    return %arg0, %c0_i32, %c0_i32_0 : i32, i32, i32
  }
  func.func @transform_4(%arg0: i32, %arg1: i32) -> (i32, i32) {
    %c0_i32 = arith.constant 0 : i32
    %c0_i32_0 = arith.constant 0 : i32
    %c0_i32_1 = arith.constant 0 : i32
    return %c0_i32, %c0_i32_0 : i32, i32
  }
  func.func @transform_5(%arg0: i32, %arg1: i32) -> (i32, i32) {
    %c0_i32 = arith.constant 0 : i32
    %c0_i32_0 = arith.constant 0 : i32
    %c0_i32_1 = arith.constant 0 : i32
    return %c0_i32, %c0_i32_0 : i32, i32
  }
  func.func @transform_6(%arg0: i32, %arg1: i32) -> (i32, i32) {
    %c0_i32 = arith.constant 0 : i32
    %c0_i32_0 = arith.constant 0 : i32
    %c0_i32_1 = arith.constant 0 : i32
    return %c0_i32, %c0_i32_0 : i32, i32
  }
  func.func @transform_7(%arg0: i32, %arg1: i32) -> (i32, i32) {
    %c0_i32 = arith.constant 0 : i32
    %c0_i32_0 = arith.constant 0 : i32
    %c0_i32_1 = arith.constant 0 : i32
    return %c0_i32, %c0_i32_0 : i32, i32
  }
  func.func @transform_8(%arg0: i32, %arg1: i32) -> (i32, i32, i32) {
    %c0_i32 = arith.constant 0 : i32
    %c0_i32_0 = arith.constant 0 : i32
    return %arg0, %arg1, %c0_i32 : i32, i32, i32
  }
}

</mosaic_0001>

<bundles_post_ra>
// kernel: dit_block_with_cross_attention.9
= control target key start
LH: loop header
LB: loop body
LE: loop exit
PB: predicated region body
PF: predicated region fallthrough
CT: control target
= control target key end

     0   :  { %s734_s12 = smov 0   ;;  %s736_s13 = smov 0   ;;  %s803_s0 = inlined_call_operand.vmem [shape: f32[2,4,8,8], index: 0, kind: input, shape index: {}]   ;;  %s804_s1 = inlined_call_operand.vmem [shape: f32[2,4,8,8], index: 1, kind: input, shape index: {}]   ;;  %s805_s2 = inlined_call_operand.vmem [shape: f32[2,4,8,8], index: 2, kind: input, shape index: {}]   ;;  %s806_s3 = inlined_call_operand.vmem [shape: f32[2,4,8,8], index: 3, kind: output, shape index: {}]  }
   0x1   :  { %s738_s14 = smov 0   ;;  %s740_s15 = smov 0  }
   0x2   :  { %s742_s16 = smov 0  }
   0x3 LB: > { %s28_s17 = sadd.s32 1, %s702_s14  ;;  %s32_s18 = sadd.s32 1, %s706_s15  ;;  %s710_s16 = sphi %s742_s16, %s13_s16   ;;  %s706_s15 = sphi %s740_s15, %s810_s15   ;;  %s702_s14 = sphi %s738_s14, %s809_s14   ;;  %s698_s13 = sphi %s736_s13, %s808_s13   ;;  %s694_s12 = sphi %s734_s12, %s807_s12  }
   0x4   : > { %p30_p0 = scmp.ge.s32.totalorder %s28_s17, 4  ;;  %p598_p1 = scmp.ge.s32.totalorder %s710_s16, 1 }
   0x5   : > { %p200_p2 = scmp.lt.s32.totalorder %s710_s16, 9 }
   0x6   : > { %s812_s17 = smov (%p30_p0, %s28_s17), 0  ;;  %s814_s18 = smov (!%p30_p0, %s32_s18), %s706_s15 }
   0x7   : > { %p201_p3 = pnand %p598_p1, %p200_p2  ;;  %p34_p4 = scmp.ge.s32.totalorder %s814_s18, 2 }
   0x8   : > { %p252_p5 = scmp.lt.s32.totalorder (!%p201_p3), %s698_s13, 1  ;;  %p254_p6 = scmp.lt.s32.totalorder (!%p201_p3), %s694_s12, 3  ;;  %v712_v0 = vmov (!%p201_p3), 0.0   ;;  %vm713_vm0 = vmmov (!%p201_p3), 0   ;;  %vm293_vm1 = vcmask (!%p201_p3), 64512  }
   0x9   : > { %s816_s18 = smov (%p34_p4, %s814_s18), 0  ;;  %204 = sbr.rel (%p201_p3) target bundleno = 764 (0x2fc), region = 32 }
   0xa   : > { %616 = vmatprep.subr.mxu0 (!%p201_p3), %v712_v0  ;;  %618 = vmatprep.mubr.msk.f32.mxu0 (!%p201_p3), %vm713_vm0, %v712_v0 }
   0xb   : > { %621 = vmatprep.subr.mxu1 (!%p201_p3), %v712_v0  ;;  %623 = vmatprep.mubr.msk.f32.mxu1 (!%p201_p3), %vm713_vm0, %v712_v0 }
  0x10   : > { %s818_s13 = smov (!%p252_p5, %s698_s13), 1  ;;  %s820_s12 = smov (!%p254_p6, %s694_s12), 3 }
  0x11   : > { %s599_s19 = sshll.u32 %s818_s13, 2 }
  0x12   : > { %s260_s20 = sadd.s32 %s599_s19, %s820_s12 }
  0x13   : > { %s764_s21 = sshll.u32 %s260_s20, 3 }
  0x14   : > { %s270_s24 = scalar_lea.vmem %s804_s1, %s764_s21  ;;  %s262_s27 = scalar_lea.vmem %s803_s0, %s764_s21 }
  0x15   : > { %v292_v1 = vld [vmem:[%s270_s24] sm:$0xff]  ;;  %s278_s30 = scalar_lea.vmem %s805_s2, %s764_s21  ;;  %s289_s6 = scalar_lea.vmem %s806_s3, %s764_s21 }
  0x16   : > { %v290_v2 = vld [vmem:[%s262_s27] sm:$0xff]  ;;  %617 = vmatpush3.xpose.msk.msra.mxu0 %vm293_vm1, %v292_v1 }
  0x17   : > { %v291_v3 = vmul.f32 0.35355338, %v290_v2  ;;  %v381_v12 = vld [vmem:[%s278_s30] sm:$0xff] }
  0x18   : > { %622 = vmatpush3.msra.mxu1 %v381_v12 }
  0x19   : > { %619 = vmatmul.mubr.msk.f32.vlgmr.msra.gmra.mrb[0].mxu0 %vm293_vm1, %v291_v3 }
  0xec   : > { %v366_v4 = vpop.f32.mrb[0].mxu0 }
  0xed   : > { %v620_v5 = vpop.f32.mrb[1].mxu0  ;;  %v370_v6 = vsel %vm293_vm1, %v366_v4, -inf }
  0xee   : > { %371 = vmax.xlane.f32.xlu0 %v370_v6 }
 0x17b   : > { %v372_v7 = vpop.xlane.xlu0 %371 }
 0x17c   : > { %v373_v8 = vsub.f32 %v366_v4, %v372_v7 }
 0x17e   : > { %v374_v9 = vmul.f32 1.442695, %v373_v8 }
 0x180   : > { %668 = vpow2.f32 %v374_v9 }
 0x18a   : > { %v669_v10 = vpop.eup %668 }
 0x18b   : > { %v376_v11 = vsel %vm293_vm1, %v669_v10, 0.0 }
 0x18c   : > { %377 = vadd.xlane.f32.xlu0 %v376_v11 }
 0x219   : > { %v378_v13 = vpop.xlane.xlu0 %377 }
 0x21a   : > { %670 = vrcp.f32 %v378_v13 }
 0x224   : > { %v671_v14 = vpop.eup %670 }
 0x225   : > { %v380_v15 = vmul.f32 %v671_v14, %v669_v10 }
 0x227   : > { %624 = vmatmul.mubr.msk.f32.vlgmr.msra.gmra.mrb[0].mxu1 %vm293_vm1, %v380_v15 }
 0x2fa   : > { %v451_v16 = vpop.f32.mrb[0].mxu1 }
 0x2fb   : > { %455 = vst.msk [vmem:[%s289_s6] sm:$0xff] %vm293_vm1, %v451_v16  ;;  %v625_v17 = vpop.f32.mrb[1].mxu1 }
 0x2fc PF: > { %s13_s16 = sadd.s32 1, %s710_s16   ;;  %s807_s12 = smov %s702_s14 }
 0x2fd   : > { %p10_p7 = scmp.ge.s32.totalorder %s13_s16, 10   ;;  %s808_s13 = smov %s706_s15 }
 0x2fe   : > { %s809_s14 = smov %s812_s17  ;;  %s810_s15 = smov %s816_s18 }
 0x2ff   :  { %12 = sbr.rel (!%p10_p7) target bundleno = 3 (0x3), region = 68 }

// kernel: dit_block_with_cross_attention.8
= control target key start
LH: loop header
LB: loop body
LE: loop exit
PB: predicated region body
PF: predicated region fallthrough
CT: control target
= control target key end

     0   :  { %s610_s18 = smov 0   ;;  %s612_s19 = smov 0   ;;  %s676_s0 = inlined_call_operand.vmem [shape: f32[2,8,32], index: 0, kind: input, shape index: {}]   ;;  %s677_s1 = inlined_call_operand.vmem [shape: f32[2,1,32], index: 1, kind: input, shape index: {}]   ;;  %s678_s2 = inlined_call_operand.vmem [shape: f32[2,1,32], index: 2, kind: input, shape index: {}]   ;;  %s679_s3 = inlined_call_operand.vmem [shape: f32[32,96], index: 3, kind: input, shape index: {}]   ;;  %s680_s4 = inlined_call_operand.vmem [shape: f32[1,96], index: 4, kind: input, shape index: {}]   ;;  %s681_s5 = inlined_call_operand.vmem [shape: f32[2,8,96], index: 5, kind: output, shape index: {}]  }
   0x1   :  { %s614_s20 = smov 0  }
   0x2 LB: > { %s27_s21 = sadd.s32 1, %s571_s19  ;;  %p494_p0 = scmp.ge.s32.totalorder %s575_s20, 1  ;;  %s575_s20 = sphi %s614_s20, %s15_s20   ;;  %s571_s19 = sphi %s612_s19, %s683_s19   ;;  %s567_s18 = sphi %s610_s18, %s682_s18  }
   0x3   : > { %p29_p1 = scmp.ge.s32.totalorder %s27_s21, 2  ;;  %p221_p2 = scmp.lt.s32.totalorder %s575_s20, 3 }
   0x5   : > { %s685_s21 = smov (%p29_p1, %s27_s21), 0  ;;  %p222_p3 = pnand %p494_p0, %p221_p2 }
   0x6   : > { %p259_p4 = scmp.lt.s32.totalorder (!%p222_p3), %s567_s18, 1  ;;  %vm282_vm0 = vcmask (!%p222_p3), 261120   ;;  %v312_v7 = vld [vmem:[%s679_s3] sm:$0xff] (!%p222_p3)  ;;  %v313_v8 = vld [vmem:[%s679_s3 + $0x8] sm:$0xff] (!%p222_p3)  ;;  %v314_v9 = vld [vmem:[%s679_s3 + $0x10] sm:$0xff] (!%p222_p3)  ;;  %v577_v10 = vmov (!%p222_p3), 0.0|0.0   ;;  %v299_v17 = vlaneseq (!%p222_p3) }
   0x7   : > { %225 = sbr.rel (%p222_p3) target bundleno = 546 (0x222), region = 40  ;;  %518 = vmatprep.subr.bf16.mxu0 (!%p222_p3), %v577_v10  ;;  %v519_v11 = vpack.c.bf16 (!%p222_p3), %v313_v8, %v312_v7  ;;  %v315_v12 = vld [vmem:[%s679_s3 + $0x18] sm:$0xff] (!%p222_p3)  ;;  %vm578_vm1 = vmmov (!%p222_p3), 0   ;;  %v579_v13 = vmov (!%p222_p3), 0.0   ;;  %v498_v29 = vld [vmem:[%s680_s4] ss:$0 sm:$0xff] (!%p222_p3) }
   0x8   : > { %515 = vmatprep.mubr.msk.f32.mxu0 (!%p222_p3), %vm578_vm1, %v579_v13  ;;  %v522_v14 = vpack.c.bf16 (!%p222_p3), %v315_v12, %v314_v9  ;;  %v300_v19 = vshrl.u32 (!%p222_p3), %v299_v17, 7  ;;  %vm396_vm2 = vcmask (!%p222_p3), 785408  }
   0x9   : > { %520 = vmatpush3.bf16.msra.mxu0 (!%p222_p3), %v519_v11 }
   0xa   : > { %521 = vmatprep.subr.bf16.mxu0 (!%p222_p3), %v577_v10  ;;  %v301_v22 = vsub.s32 (!%p222_p3), 0, %v300_v19 }
   0xd   : > { %523 = vmatpush3.bf16.msra.mxu0 (!%p222_p3), %v522_v14 }
   0xe   : > { %s687_s18 = smov (!%p259_p4, %s567_s18), 1 }
   0xf   : > { %s495_s22 = sshll.u32 %s687_s18, 3  ;;  %s271_s11 = scalar_lea.vmem %s678_s2, %s687_s18 }
  0x10   : > { %s265_s25 = scalar_lea.vmem %s676_s0, %s495_s22  ;;  %v281_v20 = vld [vmem:[%s271_s11] sm:$0x1]  ;;  %s268_s14 = scalar_lea.vmem %s677_s1, %s687_s18 }
  0x11   : > { %v279_v0 = vld [vmem:[%s265_s25] sm:$0xff]  ;;  %v297_v21 = vadd.f32 1.0, %v281_v20  ;;  %s278_s24 = scalar_lea.vmem %s681_s5, %s495_s22 }
  0x12   : > { %v283_v1 = vsel %vm282_vm0, %v279_v0, 0.0  ;;  %v497_v26 = vld [vmem:[%s268_s14] ss:$0 sm:$0xff] }
  0x13   : > { %284 = vadd.xlane.f32.xlu0 %v283_v1  ;;  %v302_v23 = vrot.slane %v297_v21, %v301_v22 }
  0xa0   : > { %v285_v2 = vpop.xlane.xlu0 %284 }
  0xa1   : > { %v287_v3 = vmul.f32 0.03125, %v285_v2 }
  0xa3   : > { %v288_v4 = vsub.f32 %v279_v0, %v287_v3 }
  0xa5   : > { %v289_v5 = vmul.f32 %v288_v4, %v288_v4 }
  0xa7   : > { %v290_v6 = vsel %vm282_vm0, %v289_v5, 0.0 }
  0xa8   : > { %291 = vadd.xlane.f32.xlu0 %v290_v6 }
 0x135   : > { %v292_v15 = vpop.xlane.xlu0 %291 }
 0x136   : > { %v293_v16 = vmul.f32 0.03125, %v292_v15 }
 0x138   : > { %v294_v18 = vadd.f32 1e-06, %v293_v16 }
 0x13a   : > { %551 = vrsqrt.f32 %v294_v18 }
 0x144   : > { %v552_v24 = vpop.eup %551 }
 0x145   : > { %v296_v25 = vmul.f32 %v552_v24, %v288_v4 }
 0x147   : > { %v304_v27 = vmul.f32 %v302_v23, %v296_v25 }
 0x149   : > { %v311_v28 = vadd.f32 %v497_v26, %v304_v27 }
 0x14b   : > { %516 = vmatmul.mubr.msk.f32.vlgmr.msra.gmra.mrb[0].mxu0 %vm282_vm0, %v311_v28 }
 0x21e   : > { %v392_v30 = vpop.f32.mrb[0].mxu0 }
 0x21f   : > { %v393_v31 = vadd.f32 %v498_v29, %v392_v30  ;;  %v517_v32 = vpop.f32.mrb[1].mxu0 }
 0x221   : > { %397 = vst.msk [vmem:[%s278_s24] sm:$0xff] %vm396_vm2, %v393_v31 }
 0x222 PF: > { %s15_s20 = sadd.s32 1, %s575_s20   ;;  %s682_s18 = smov %s571_s19 }
 0x223   : > { %p12_p5 = scmp.ge.s32.totalorder %s15_s20, 4   ;;  %s683_s19 = smov %s685_s21 }
 0x225   :  { %14 = sbr.rel (!%p12_p5) target bundleno = 2 (0x2), region = 76 }

// kernel: dit_block_with_cross_attention.10
= control target key start
LH: loop header
LB: loop body
LE: loop exit
PB: predicated region body
PF: predicated region fallthrough
CT: control target
= control target key end

     0   :  { %s607_s18 = smov 0   ;;  %s609_s19 = smov 0   ;;  %s661_s0 = inlined_call_operand.vmem [shape: f32[2,8,32], index: 0, kind: input, shape index: {}]   ;;  %s662_s1 = inlined_call_operand.vmem [shape: f32[2,8,32], index: 1, kind: input, shape index: {}]   ;;  %s663_s2 = inlined_call_operand.vmem [shape: f32[2,1,32], index: 2, kind: input, shape index: {}]   ;;  %s664_s3 = inlined_call_operand.vmem [shape: f32[32,32], index: 3, kind: input, shape index: {}]   ;;  %s665_s4 = inlined_call_operand.vmem [shape: f32[1,32], index: 4, kind: input, shape index: {}]   ;;  %s666_s5 = inlined_call_operand.vmem [shape: f32[2,8,32], index: 5, kind: output, shape index: {}]  }
   0x1   :  { %s611_s20 = smov 0  }
   0x2 LB: > { %s27_s21 = sadd.s32 1, %s568_s19  ;;  %p492_p0 = scmp.ge.s32.totalorder %s572_s20, 1  ;;  %s572_s20 = sphi %s611_s20, %s15_s20   ;;  %s568_s19 = sphi %s609_s19, %s668_s19   ;;  %s564_s18 = sphi %s607_s18, %s667_s18  }
   0x3   : > { %p29_p1 = scmp.ge.s32.totalorder %s27_s21, 2  ;;  %p227_p2 = scmp.lt.s32.totalorder %s572_s20, 3 }
   0x5   : > { %s670_s21 = smov (%p29_p1, %s27_s21), 0  ;;  %p228_p3 = pnand %p492_p0, %p227_p2 }
   0x6   : > { %v294_v0 = vld [vmem:[%s664_s3] sm:$0xff] (!%p228_p3)  ;;  %v295_v1 = vld [vmem:[%s664_s3 + $0x8] sm:$0xff] (!%p228_p3)  ;;  %v296_v2 = vld [vmem:[%s664_s3 + $0x10] sm:$0xff] (!%p228_p3)  ;;  %v574_v3 = vmov (!%p228_p3), 0.0|0.0   ;;  %vm575_vm0 = vmmov (!%p228_p3), 0   ;;  %v576_v6 = vmov (!%p228_p3), 0.0  }
   0x7   : > { %231 = sbr.rel (%p228_p3) target bundleno = 237 (0xed), region = 40  ;;  %517 = vmatprep.subr.bf16.mxu0 (!%p228_p3), %v574_v3  ;;  %v518_v4 = vpack.c.bf16 (!%p228_p3), %v295_v1, %v294_v0  ;;  %v297_v5 = vld [vmem:[%s664_s3 + $0x18] sm:$0xff] (!%p228_p3)  ;;  %514 = vmatprep.mubr.msk.f32.mxu0 (!%p228_p3), %vm575_vm0, %v576_v6  ;;  %p269_p4 = scmp.lt.s32.totalorder (!%p228_p3), %s564_s18, 1  ;;  %vm305_vm1 = vcmask (!%p228_p3), 261120   ;;  %v496_v9 = vld [vmem:[%s665_s4] ss:$0 sm:$0xff] (!%p228_p3) }
   0x8   : > { %v521_v7 = vpack.c.bf16 (!%p228_p3), %v297_v5, %v296_v2 }
   0x9   : > { %519 = vmatpush3.bf16.msra.mxu0 (!%p228_p3), %v518_v4 }
   0xa   : > { %520 = vmatprep.subr.bf16.mxu0 (!%p228_p3), %v574_v3 }
   0xd   : > { %522 = vmatpush3.bf16.msra.mxu0 (!%p228_p3), %v521_v7 }
   0xe   : > { %s672_s18 = smov (!%p269_p4, %s564_s18), 1 }
   0xf   : > { %s493_s30 = sshll.u32 %s672_s18, 3  ;;  %s285_s11 = scalar_lea.vmem %s663_s2, %s672_s18 }
  0x10   : > { %s275_s8 = scalar_lea.vmem %s661_s0, %s493_s30  ;;  %s282_s16 = scalar_lea.vmem %s662_s1, %s493_s30  ;;  %v498_v11 = vld [vmem:[%s285_s11] ss:$0 sm:$0xff] }
  0x11   : > { %v293_v8 = vld [vmem:[%s275_s8] sm:$0xff]  ;;  %s292_s23 = scalar_lea.vmem %s666_s5, %s493_s30 }
  0x12   : > { %515 = vmatmul.mubr.msk.f32.vlgmr.msra.gmra.mrb[0].mxu0 %vm305_vm1, %v293_v8  ;;  %v379_v14 = vld [vmem:[%s282_s16] sm:$0xff] }
  0xe5   : > { %v375_v10 = vpop.f32.mrb[0].mxu0 }
  0xe6   : > { %v376_v12 = vadd.f32 %v496_v9, %v375_v10  ;;  %v516_v13 = vpop.f32.mrb[1].mxu0 }
  0xe8   : > { %v387_v15 = vmul.f32 %v498_v11, %v376_v12 }
  0xea   : > { %v388_v16 = vadd.f32 %v387_v15, %v379_v14 }
  0xec   : > { %389 = vst.msk [vmem:[%s292_s23] sm:$0xff] %vm305_vm1, %v388_v16 }
  0xed PF: > { %s15_s20 = sadd.s32 1, %s572_s20   ;;  %s667_s18 = smov %s568_s19 }
  0xee   : > { %p12_p5 = scmp.ge.s32.totalorder %s15_s20, 4   ;;  %s668_s19 = smov %s670_s21 }
  0xf0   :  { %14 = sbr.rel (!%p12_p5) target bundleno = 2 (0x2), region = 76 }

// kernel: dit_block_with_cross_attention.11
= control target key start
LH: loop header
LB: loop body
LE: loop exit
PB: predicated region body
PF: predicated region fallthrough
CT: control target
= control target key end

     0   :  { %s609_s18 = smov 0   ;;  %s611_s19 = smov 0   ;;  %s676_s0 = inlined_call_operand.vmem [shape: f32[2,8,32], index: 0, kind: input, shape index: {}]   ;;  %s677_s1 = inlined_call_operand.vmem [shape: f32[2,1,32], index: 1, kind: input, shape index: {}]   ;;  %s678_s2 = inlined_call_operand.vmem [shape: f32[2,1,32], index: 2, kind: input, shape index: {}]   ;;  %s679_s3 = inlined_call_operand.vmem [shape: f32[32,32], index: 3, kind: input, shape index: {}]   ;;  %s680_s4 = inlined_call_operand.vmem [shape: f32[1,32], index: 4, kind: input, shape index: {}]   ;;  %s681_s5 = inlined_call_operand.vmem [shape: f32[2,8,32], index: 5, kind: output, shape index: {}]  }
   0x1   :  { %s613_s20 = smov 0  }
   0x2 LB: > { %s27_s21 = sadd.s32 1, %s570_s19  ;;  %p493_p0 = scmp.ge.s32.totalorder %s574_s20, 1  ;;  %s574_s20 = sphi %s613_s20, %s15_s20   ;;  %s570_s19 = sphi %s611_s19, %s683_s19   ;;  %s566_s18 = sphi %s609_s18, %s682_s18  }
   0x3   : > { %p29_p1 = scmp.ge.s32.totalorder %s27_s21, 2  ;;  %p221_p2 = scmp.lt.s32.totalorder %s574_s20, 3 }
   0x5   : > { %s685_s21 = smov (%p29_p1, %s27_s21), 0  ;;  %p222_p3 = pnand %p493_p0, %p221_p2 }
   0x6   : > { %p259_p4 = scmp.lt.s32.totalorder (!%p222_p3), %s566_s18, 1  ;;  %vm282_vm0 = vcmask (!%p222_p3), 261120   ;;  %v312_v7 = vld [vmem:[%s679_s3] sm:$0xff] (!%p222_p3)  ;;  %v313_v8 = vld [vmem:[%s679_s3 + $0x8] sm:$0xff] (!%p222_p3)  ;;  %v314_v9 = vld [vmem:[%s679_s3 + $0x10] sm:$0xff] (!%p222_p3)  ;;  %v576_v10 = vmov (!%p222_p3), 0.0|0.0   ;;  %v299_v17 = vlaneseq (!%p222_p3) }
   0x7   : > { %225 = sbr.rel (%p222_p3) target bundleno = 546 (0x222), region = 40  ;;  %517 = vmatprep.subr.bf16.mxu0 (!%p222_p3), %v576_v10  ;;  %v518_v11 = vpack.c.bf16 (!%p222_p3), %v313_v8, %v312_v7  ;;  %v315_v12 = vld [vmem:[%s679_s3 + $0x18] sm:$0xff] (!%p222_p3)  ;;  %vm577_vm1 = vmmov (!%p222_p3), 0   ;;  %v578_v13 = vmov (!%p222_p3), 0.0   ;;  %v497_v29 = vld [vmem:[%s680_s4] ss:$0 sm:$0xff] (!%p222_p3) }
   0x8   : > { %514 = vmatprep.mubr.msk.f32.mxu0 (!%p222_p3), %vm577_vm1, %v578_v13  ;;  %v521_v14 = vpack.c.bf16 (!%p222_p3), %v315_v12, %v314_v9  ;;  %v300_v19 = vshrl.u32 (!%p222_p3), %v299_v17, 7 }
   0x9   : > { %519 = vmatpush3.bf16.msra.mxu0 (!%p222_p3), %v518_v11 }
   0xa   : > { %520 = vmatprep.subr.bf16.mxu0 (!%p222_p3), %v576_v10  ;;  %v301_v22 = vsub.s32 (!%p222_p3), 0, %v300_v19 }
   0xd   : > { %522 = vmatpush3.bf16.msra.mxu0 (!%p222_p3), %v521_v14 }
   0xe   : > { %s687_s18 = smov (!%p259_p4, %s566_s18), 1 }
   0xf   : > { %s494_s22 = sshll.u32 %s687_s18, 3  ;;  %s271_s11 = scalar_lea.vmem %s678_s2, %s687_s18 }
  0x10   : > { %s265_s25 = scalar_lea.vmem %s676_s0, %s494_s22  ;;  %v281_v20 = vld [vmem:[%s271_s11] sm:$0x1]  ;;  %s268_s14 = scalar_lea.vmem %s677_s1, %s687_s18 }
  0x11   : > { %v279_v0 = vld [vmem:[%s265_s25] sm:$0xff]  ;;  %v297_v21 = vadd.f32 1.0, %v281_v20  ;;  %s278_s24 = scalar_lea.vmem %s681_s5, %s494_s22 }
  0x12   : > { %v283_v1 = vsel %vm282_vm0, %v279_v0, 0.0  ;;  %v496_v26 = vld [vmem:[%s268_s14] ss:$0 sm:$0xff] }
  0x13   : > { %284 = vadd.xlane.f32.xlu0 %v283_v1  ;;  %v302_v23 = vrot.slane %v297_v21, %v301_v22 }
  0xa0   : > { %v285_v2 = vpop.xlane.xlu0 %284 }
  0xa1   : > { %v287_v3 = vmul.f32 0.03125, %v285_v2 }
  0xa3   : > { %v288_v4 = vsub.f32 %v279_v0, %v287_v3 }
  0xa5   : > { %v289_v5 = vmul.f32 %v288_v4, %v288_v4 }
  0xa7   : > { %v290_v6 = vsel %vm282_vm0, %v289_v5, 0.0 }
  0xa8   : > { %291 = vadd.xlane.f32.xlu0 %v290_v6 }
 0x135   : > { %v292_v15 = vpop.xlane.xlu0 %291 }
 0x136   : > { %v293_v16 = vmul.f32 0.03125, %v292_v15 }
 0x138   : > { %v294_v18 = vadd.f32 1e-06, %v293_v16 }
 0x13a   : > { %550 = vrsqrt.f32 %v294_v18 }
 0x144   : > { %v551_v24 = vpop.eup %550 }
 0x145   : > { %v296_v25 = vmul.f32 %v551_v24, %v288_v4 }
 0x147   : > { %v304_v27 = vmul.f32 %v302_v23, %v296_v25 }
 0x149   : > { %v311_v28 = vadd.f32 %v496_v26, %v304_v27 }
 0x14b   : > { %515 = vmatmul.mubr.msk.f32.vlgmr.msra.gmra.mrb[0].mxu0 %vm282_vm0, %v311_v28 }
 0x21e   : > { %v392_v30 = vpop.f32.mrb[0].mxu0 }
 0x21f   : > { %v393_v31 = vadd.f32 %v497_v29, %v392_v30  ;;  %v516_v32 = vpop.f32.mrb[1].mxu0 }
 0x221   : > { %396 = vst.msk [vmem:[%s278_s24] sm:$0xff] %vm282_vm0, %v393_v31 }
 0x222 PF: > { %s15_s20 = sadd.s32 1, %s574_s20   ;;  %s682_s18 = smov %s570_s19 }
 0x223   : > { %p12_p5 = scmp.ge.s32.totalorder %s15_s20, 4   ;;  %s683_s19 = smov %s685_s21 }
 0x225   :  { %14 = sbr.rel (!%p12_p5) target bundleno = 2 (0x2), region = 76 }

// kernel: dit_block_with_cross_attention.12
= control target key start
LH: loop header
LB: loop body
LE: loop exit
PB: predicated region body
PF: predicated region fallthrough
CT: control target
= control target key end

     0   :  { %s610_s18 = smov 0   ;;  %s612_s19 = smov 0   ;;  %s676_s0 = inlined_call_operand.vmem [shape: f32[2,8,32], index: 0, kind: input, shape index: {}]   ;;  %s677_s1 = inlined_call_operand.vmem [shape: f32[2,1,32], index: 1, kind: input, shape index: {}]   ;;  %s678_s2 = inlined_call_operand.vmem [shape: f32[2,1,32], index: 2, kind: input, shape index: {}]   ;;  %s679_s3 = inlined_call_operand.vmem [shape: f32[32,64], index: 3, kind: input, shape index: {}]   ;;  %s680_s4 = inlined_call_operand.vmem [shape: f32[1,64], index: 4, kind: input, shape index: {}]   ;;  %s681_s5 = inlined_call_operand.vmem [shape: f32[2,8,64], index: 5, kind: output, shape index: {}]  }
   0x1   :  { %s614_s20 = smov 0  }
   0x2 LB: > { %s27_s21 = sadd.s32 1, %s571_s19  ;;  %p494_p0 = scmp.ge.s32.totalorder %s575_s20, 1  ;;  %s575_s20 = sphi %s614_s20, %s15_s20   ;;  %s571_s19 = sphi %s612_s19, %s683_s19   ;;  %s567_s18 = sphi %s610_s18, %s682_s18  }
   0x3   : > { %p29_p1 = scmp.ge.s32.totalorder %s27_s21, 2  ;;  %p221_p2 = scmp.lt.s32.totalorder %s575_s20, 3 }
   0x5   : > { %s685_s21 = smov (%p29_p1, %s27_s21), 0  ;;  %p222_p3 = pnand %p494_p0, %p221_p2 }
   0x6   : > { %p259_p4 = scmp.lt.s32.totalorder (!%p222_p3), %s567_s18, 1  ;;  %vm282_vm0 = vcmask (!%p222_p3), 261120   ;;  %v312_v7 = vld [vmem:[%s679_s3] sm:$0xff] (!%p222_p3)  ;;  %v313_v8 = vld [vmem:[%s679_s3 + $0x8] sm:$0xff] (!%p222_p3)  ;;  %v314_v9 = vld [vmem:[%s679_s3 + $0x10] sm:$0xff] (!%p222_p3)  ;;  %v577_v10 = vmov (!%p222_p3), 0.0|0.0   ;;  %v299_v17 = vlaneseq (!%p222_p3) }
   0x7   : > { %225 = sbr.rel (%p222_p3) target bundleno = 546 (0x222), region = 40  ;;  %518 = vmatprep.subr.bf16.mxu0 (!%p222_p3), %v577_v10  ;;  %v519_v11 = vpack.c.bf16 (!%p222_p3), %v313_v8, %v312_v7  ;;  %v315_v12 = vld [vmem:[%s679_s3 + $0x18] sm:$0xff] (!%p222_p3)  ;;  %vm578_vm1 = vmmov (!%p222_p3), 0   ;;  %v579_v13 = vmov (!%p222_p3), 0.0   ;;  %v498_v29 = vld [vmem:[%s680_s4] ss:$0 sm:$0xff] (!%p222_p3) }
   0x8   : > { %515 = vmatprep.mubr.msk.f32.mxu0 (!%p222_p3), %vm578_vm1, %v579_v13  ;;  %v522_v14 = vpack.c.bf16 (!%p222_p3), %v315_v12, %v314_v9  ;;  %v300_v19 = vshrl.u32 (!%p222_p3), %v299_v17, 7  ;;  %vm396_vm2 = vcmask (!%p222_p3), 523264  }
   0x9   : > { %520 = vmatpush3.bf16.msra.mxu0 (!%p222_p3), %v519_v11 }
   0xa   : > { %521 = vmatprep.subr.bf16.mxu0 (!%p222_p3), %v577_v10  ;;  %v301_v22 = vsub.s32 (!%p222_p3), 0, %v300_v19 }
   0xd   : > { %523 = vmatpush3.bf16.msra.mxu0 (!%p222_p3), %v522_v14 }
   0xe   : > { %s687_s18 = smov (!%p259_p4, %s567_s18), 1 }
   0xf   : > { %s495_s22 = sshll.u32 %s687_s18, 3  ;;  %s271_s11 = scalar_lea.vmem %s678_s2, %s687_s18 }
  0x10   : > { %s265_s25 = scalar_lea.vmem %s676_s0, %s495_s22  ;;  %v281_v20 = vld [vmem:[%s271_s11] sm:$0x1]  ;;  %s268_s14 = scalar_lea.vmem %s677_s1, %s687_s18 }
  0x11   : > { %v279_v0 = vld [vmem:[%s265_s25] sm:$0xff]  ;;  %v297_v21 = vadd.f32 1.0, %v281_v20  ;;  %s278_s24 = scalar_lea.vmem %s681_s5, %s495_s22 }
  0x12   : > { %v283_v1 = vsel %vm282_vm0, %v279_v0, 0.0  ;;  %v497_v26 = vld [vmem:[%s268_s14] ss:$0 sm:$0xff] }
  0x13   : > { %284 = vadd.xlane.f32.xlu0 %v283_v1  ;;  %v302_v23 = vrot.slane %v297_v21, %v301_v22 }
  0xa0   : > { %v285_v2 = vpop.xlane.xlu0 %284 }
  0xa1   : > { %v287_v3 = vmul.f32 0.03125, %v285_v2 }
  0xa3   : > { %v288_v4 = vsub.f32 %v279_v0, %v287_v3 }
  0xa5   : > { %v289_v5 = vmul.f32 %v288_v4, %v288_v4 }
  0xa7   : > { %v290_v6 = vsel %vm282_vm0, %v289_v5, 0.0 }
  0xa8   : > { %291 = vadd.xlane.f32.xlu0 %v290_v6 }
 0x135   : > { %v292_v15 = vpop.xlane.xlu0 %291 }
 0x136   : > { %v293_v16 = vmul.f32 0.03125, %v292_v15 }
 0x138   : > { %v294_v18 = vadd.f32 1e-06, %v293_v16 }
 0x13a   : > { %551 = vrsqrt.f32 %v294_v18 }
 0x144   : > { %v552_v24 = vpop.eup %551 }
 0x145   : > { %v296_v25 = vmul.f32 %v552_v24, %v288_v4 }
 0x147   : > { %v304_v27 = vmul.f32 %v302_v23, %v296_v25 }
 0x149   : > { %v311_v28 = vadd.f32 %v497_v26, %v304_v27 }
 0x14b   : > { %516 = vmatmul.mubr.msk.f32.vlgmr.msra.gmra.mrb[0].mxu0 %vm282_vm0, %v311_v28 }
 0x21e   : > { %v392_v30 = vpop.f32.mrb[0].mxu0 }
 0x21f   : > { %v393_v31 = vadd.f32 %v498_v29, %v392_v30  ;;  %v517_v32 = vpop.f32.mrb[1].mxu0 }
 0x221   : > { %397 = vst.msk [vmem:[%s278_s24] sm:$0xff] %vm396_vm2, %v393_v31 }
 0x222 PF: > { %s15_s20 = sadd.s32 1, %s575_s20   ;;  %s682_s18 = smov %s571_s19 }
 0x223   : > { %p12_p5 = scmp.ge.s32.totalorder %s15_s20, 4   ;;  %s683_s19 = smov %s685_s21 }
 0x225   :  { %14 = sbr.rel (!%p12_p5) target bundleno = 2 (0x2), region = 76 }

// kernel: dit_block_with_cross_attention.15
= control target key start
LH: loop header
LB: loop body
LE: loop exit
PB: predicated region body
PF: predicated region fallthrough
CT: control target
= control target key end

     0   :  { %s1227_s0 = inlined_call_operand.vmem [shape: f32[2,8,32], index: 0, kind: input, shape index: {}]   ;;  %s1228_s1 = inlined_call_operand.vmem [shape: f32[2,1,32], index: 1, kind: input, shape index: {}]   ;;  %s1229_s2 = inlined_call_operand.vmem [shape: f32[2,1,32], index: 2, kind: input, shape index: {}]   ;;  %s1230_s3 = inlined_call_operand.vmem [shape: f32[2,1,32], index: 3, kind: input, shape index: {}]   ;;  %s1231_s4 = inlined_call_operand.vmem [shape: f32[32,128], index: 4, kind: input, shape index: {}]   ;;  %s1232_s5 = inlined_call_operand.vmem [shape: f32[1,128], index: 5, kind: input, shape index: {}]   ;;  %s1233_s6 = inlined_call_operand.vmem [shape: f32[128,32], index: 6, kind: input, shape index: {}]   ;;  %s1234_s7 = inlined_call_operand.vmem [shape: f32[1,32], index: 7, kind: input, shape index: {}]   ;;  %s1235_s8 = inlined_call_operand.hbm [shape: f32[2,8,32], index: 8, kind: output, shape index: {}]  }
   0x1   :  { %1236 = sst [smem:[#allocation5_spill]] %s1227_s0 }
   0x2   :  { %13 = vsyncpa [#allocation3], 0 }
   0x3   :  { %15 = vsyncpa [#allocation3 + $0x1], 0  ;;  %s1015_s27 = smov 0   ;;  %s1017_s28 = smov 0  }
   0x4   :  { %s1019_s29 = smov 0   ;;  %s1021_s30 = smov 0  }
   0x5   :  { %s1023_s9 = smov 0   ;;  %s1025_s10 = smov 0  }
   0x6 LB: > { %s710_s11 = sadd.s32 4294967295, %s964_s10   ;;  %s711_s12 = sadd.s32 4294967294, %s964_s10   ;;  %s964_s10 = sphi %s1025_s10, %s21_s10   ;;  %s960_s9 = sphi %s1023_s9, %s1244_s9   ;;  %s956_s30 = sphi %s1021_s30, %s1243_s30   ;;  %s952_s29 = sphi %s1019_s29, %s1242_s29   ;;  %s948_s28 = sphi %s1017_s28, %s1241_s28   ;;  %s944_s27 = sphi %s1015_s27, %s1240_s27  }
   0x7   : > { %s33_s13 = sadd.s32 1, %s960_s9  ;;  %s232_s14 = sadd.s32 1, %s952_s29 }
   0x8   : > { %p35_p0 = scmp.ge.s32.totalorder %s33_s13, 2  ;;  %p242_p1 = scmp.ne.s32.totalorder %s952_s29, %s948_s28 }
   0x9   : > { %p243_p2 = scmp.eq.s32.totalorder %s710_s11, 1  ;;  %p248_p3 = scmp.ne.s32.totalorder %s948_s28, %s944_s27 }
   0xa   : > { %s1246_s13 = smov (%p35_p0, %s33_s13), 0  ;;  %p249_p5 = scmp.eq.s32.totalorder %s711_s12, 1 }
   0xb   : > { %p1055_p4 = por %p243_p2, %p242_p1  ;;  %s227_s16 = ssub.s32 %s960_s9, %s1246_s13 }
   0xc   : > { %p714_p6 = scmp.ge.s32.totalorder %s964_s10, 1  ;;  %p230_p7 = scmp.eq.s32.totalorder %s227_s16, 0 }
   0xd   : > { %p1062_p8 = por %p249_p5, %p248_p3  ;;  %p307_p9 = scmp.lt.s32.totalorder %s964_s10, 3 }
   0xe   : > { %s1068_s18 = scalar_select %p230_p7, %s952_s29, %s232_s14  }
   0xf   : > { %p308_p10 = pnand %p714_p6, %p307_p9 }
  0x10   : > { %p352_p11 = scmp.lt.s32.totalorder (!%p308_p10), %s956_s30, 1  ;;  %vm371_vm0 = vcmask (!%p308_p10), 261120   ;;  %s1239_s0 = sld [smem:[#allocation5_spill]] (!%p308_p10)  ;;  %v401_v7 = vld [vmem:[%s1231_s4] sm:$0xff] (!%p308_p10)  ;;  %v402_v8 = vld [vmem:[%s1231_s4 + $0x8] sm:$0xff] (!%p308_p10)  ;;  %v403_v9 = vld [vmem:[%s1231_s4 + $0x10] sm:$0xff] (!%p308_p10)  ;;  %v388_v20 = vlaneseq (!%p308_p10) }
  0x11   : > { %311 = sbr.rel (%p308_p10) target bundleno = 815 (0x32f), region = 52  ;;  %v966_v10 = vmov (!%p308_p10), 0.0|0.0   ;;  %v795_v11 = vpack.c.bf16 (!%p308_p10), %v402_v8, %v401_v7  ;;  %v404_v12 = vld [vmem:[%s1231_s4 + $0x18] sm:$0xff] (!%p308_p10)  ;;  %vm967_vm1 = vmmov (!%p308_p10), 0   ;;  %v968_v13 = vmov (!%p308_p10), 0.0   ;;  %v494_v15 = vld [vmem:[%s1233_s6] sm:$0xff] (!%p308_p10) }
  0x12   : > { %794 = vmatprep.subr.bf16.mxu0 (!%p308_p10), %v966_v10  ;;  %756 = vmatprep.mubr.msk.f32.mxu0 (!%p308_p10), %vm967_vm1, %v968_v13  ;;  %v798_v14 = vpack.c.bf16 (!%p308_p10), %v404_v12, %v403_v9  ;;  %v495_v16 = vld [vmem:[%s1233_s6 + $0x8] sm:$0xff] (!%p308_p10)  ;;  %v389_v22 = vshrl.u32 (!%p308_p10), %v388_v20, 7  ;;  %v496_v32 = vld [vmem:[%s1233_s6 + $0x10] sm:$0xff] (!%p308_p10)  ;;  %v497_v33 = vld [vmem:[%s1233_s6 + $0x18] sm:$0xff] (!%p308_p10)  ;;  %s349_s12 = sand.u32 (!%p308_p10), 1, %s948_s28   ;;  %s723_s24 = sshll.u32 (!%p308_p10), %s956_s30, 7 }
  0x13   : > { %800 = vmatprep.subr.bf16.mxu1 (!%p308_p10), %v966_v10  ;;  %791 = vmatprep.mubr.msk.f32.mxu1 (!%p308_p10), %vm967_vm1, %v968_v13  ;;  %v801_v17 = vpack.c.bf16 (!%p308_p10), %v495_v16, %v494_v15  ;;  %v804_v34 = vpack.c.bf16 (!%p308_p10), %v497_v33, %v496_v32  ;;  %v498_v35 = vld [vmem:[%s1233_s6 + $0x20] sm:$0xff] (!%p308_p10)  ;;  %v499_v36 = vld [vmem:[%s1233_s6 + $0x28] sm:$0xff] (!%p308_p10)  ;;  %v500_v38 = vld [vmem:[%s1233_s6 + $0x30] sm:$0xff] (!%p308_p10)  ;;  %s715_s14 = sshll.u32 (!%p308_p10), %s349_s12, 3 }
  0x14   : > { %796 = vmatpush3.bf16.msra.mxu0 (!%p308_p10), %v795_v11  ;;  %v390_v25 = vsub.s32 (!%p308_p10), 0, %v389_v22  ;;  %v807_v37 = vpack.c.bf16 (!%p308_p10), %v499_v36, %v498_v35  ;;  %v501_v39 = vld [vmem:[%s1233_s6 + $0x38] sm:$0xff] (!%p308_p10)  ;;  %v502_v41 = vld [vmem:[%s1233_s6 + $0x40] sm:$0xff] (!%p308_p10)  ;;  %v503_v42 = vld [vmem:[%s1233_s6 + $0x48] sm:$0xff] (!%p308_p10)  ;;  %s351_s25 = scalar_lea.vmem (!%p308_p10), [#allocation2], %s715_s14 }
  0x15   : > { %797 = vmatprep.subr.bf16.mxu0 (!%p308_p10), %v966_v10  ;;  %802 = vmatpush3.bf16.msra.mxu1 (!%p308_p10), %v801_v17  ;;  %v810_v40 = vpack.c.bf16 (!%p308_p10), %v501_v39, %v500_v38  ;;  %v813_v43 = vpack.c.bf16 (!%p308_p10), %v503_v42, %v502_v41  ;;  %v504_v44 = vld [vmem:[%s1233_s6 + $0x50] sm:$0xff] (!%p308_p10)  ;;  %v505_v45 = vld [vmem:[%s1233_s6 + $0x58] sm:$0xff] (!%p308_p10)  ;;  %v506_v47 = vld [vmem:[%s1233_s6 + $0x60] sm:$0xff] (!%p308_p10)  ;;  %s612_s26 = sshll.u32 (!%p308_p10), %s351_s25, 4  ;;  %s1181_s26 = int_to_ptr.vmem [resolvable:$true] %s612_s26 }
  0x16   : > { %803 = vmatprep.subr.bf16.mxu1 (!%p308_p10), %v966_v10  ;;  %v816_v46 = vpack.c.bf16 (!%p308_p10), %v505_v45, %v504_v44  ;;  %v507_v48 = vld [vmem:[%s1233_s6 + $0x68] sm:$0xff] (!%p308_p10)  ;;  %v508_v50 = vld [vmem:[%s1233_s6 + $0x70] sm:$0xff] (!%p308_p10)  ;;  %v509_v51 = vld [vmem:[%s1233_s6 + $0x78] sm:$0xff] (!%p308_p10) }
  0x17   : > { %v819_v49 = vpack.c.bf16 (!%p308_p10), %v507_v48, %v506_v47  ;;  %v822_v52 = vpack.c.bf16 (!%p308_p10), %v509_v51, %v508_v50  ;;  %v718_v53 = vld [vmem:[%s1232_s5] ss:$0 sm:$0xff] (!%p308_p10) }
  0x18   : > { %s1072_s19 = scalar_select %p352_p11, %s956_s30, 1  ;;  %799 = vmatpush3.bf16.msra.mxu0 %v798_v14 }
  0x19   : > { %805 = vmatpush3.bf16.msra.mxu1 %v804_v34  ;;  %s969_s30 = smov [#allocation2]  }
  0x1a   : > { %s716_s20 = sshll.u32 %s1072_s19, 3  ;;  %s364_s11 = scalar_lea.vmem %s1229_s2, %s1072_s19  ;;  %806 = vmatprep.subr.bf16.mxu1 %v966_v10 }
  0x1b   : > { %s358_s23 = scalar_lea.vmem %s1239_s0, %s716_s20  ;;  %v370_v23 = vld [vmem:[%s364_s11] sm:$0x1]  ;;  %s361_s16 = scalar_lea.vmem %s1228_s1, %s1072_s19 }
  0x1c   : > { %v1078_v0 = vld [vmem:[%s358_s23] sm:$0xff]  ;;  %v386_v24 = vadd.f32 1.0, %v370_v23  ;;  %s367_s21 = scalar_lea.vmem %s1230_s3, %s1072_s19  ;;  %s598_s19 = scalar_lea.sflag [#allocation3], %s349_s12 }
  0x1d   : > { %v372_v1 = vsel %vm371_vm0, %v1078_v0, 0.0  ;;  %v717_v29 = vld [vmem:[%s361_s16] ss:$0 sm:$0xff]  ;;  %808 = vmatpush3.bf16.msra.mxu1 %v807_v37  ;;  %s1179_s16 = scalar_lea.hbm %s1235_s8, %s723_s24  ;;  %s886_s20 = scalar_lea.vmem %s1181_s26, 128 }
  0x1e   : > { %373 = vadd.xlane.f32.xlu0 %v372_v1  ;;  %v391_v26 = vrot.slane %v386_v24, %v390_v25  ;;  %809 = vmatprep.subr.bf16.mxu1 %v966_v10  ;;  %p887_p12 = scmp.ne.s32.totalorder %s1181_s26, %s886_s20  ;;  %s890_s14 = sshll.u32 %s969_s30, 4  ;;  %s891_s14 = int_to_ptr.vmem [resolvable:$false] %s890_s14 }
  0x1f   : > { %p893_p1 = scmp.lt.s32.totalorder %s1181_s26, %s891_s14 }
  0x20   : > { %p888_p13 = pnand %p887_p12, %p1055_p4 }
  0x21   : > { %811 = vmatpush3.bf16.msra.mxu1 %v810_v40 }
  0x22   : > { %812 = vmatprep.subr.bf16.mxu1 %v966_v10  ;;  %p889_p0 = pneg %p888_p13 }
  0x25   : > { %814 = vmatpush3.bf16.msra.mxu1 %v813_v43 }
  0x26   : > { %815 = vmatprep.subr.bf16.mxu1 %v966_v10 }
  0x29   : > { %817 = vmatpush3.bf16.msra.mxu1 %v816_v46 }
  0x2a   : > { %818 = vmatprep.subr.bf16.mxu1 %v966_v10 }
  0x2d   : > { %820 = vmatpush3.bf16.msra.mxu1 %v819_v49 }
  0x2e   : > { %821 = vmatprep.subr.bf16.mxu1 %v966_v10 }
  0x31   : > { %823 = vmatpush3.bf16.msra.mxu1 %v822_v52 }
  0xab   : > { %v374_v2 = vpop.xlane.xlu0 %373 }
  0xac   : > { %v376_v3 = vmul.f32 0.03125, %v374_v2 }
  0xae   : > { %v377_v4 = vsub.f32 %v1078_v0, %v376_v3  ;;  %v720_v3 = vld [vmem:[%s1234_s7] ss:$0 sm:$0xff] }
  0xb0   : > { %v378_v5 = vmul.f32 %v377_v4, %v377_v4 }
  0xb2   : > { %v379_v6 = vsel %vm371_vm0, %v378_v5, 0.0  ;;  %v721_v5 = vld [vmem:[%s367_s21] ss:$0 sm:$0xff]  ;;  %s892_s21 = scalar_lea.vmem %s891_s14, 256 }
  0xb3   : > { %380 = vadd.xlane.f32.xlu0 %v379_v6  ;;  %p894_p2 = scmp.lt.s32.totalorder %s892_s21, %s886_s20 }
  0xb5   : > { %p895_p3 = por %p894_p2, %p893_p1 }
  0xb7   : > { %p896_p5 = pnand %p895_p3, %p889_p0 }
 0x140   : > { %v381_v18 = vpop.xlane.xlu0 %380 }
 0x141   : > { %v382_v19 = vmul.f32 0.03125, %v381_v18 }
 0x143   : > { %v383_v21 = vadd.f32 1e-06, %v382_v19 }
 0x145   : > { %882 = vrsqrt.f32 %v383_v21 }
 0x14f   : > { %v883_v27 = vpop.eup %882 }
 0x150   : > { %v385_v28 = vmul.f32 %v883_v27, %v377_v4 }
 0x152   : > { %v393_v30 = vmul.f32 %v391_v26, %v385_v28 }
 0x154   : > { %v400_v31 = vadd.f32 %v717_v29, %v393_v30 }
 0x156   : > { %757 = vmatmul.mubr.msk.f32.vlgmr.msra.gmra.mrb[0].mxu0 %vm371_vm0, %v400_v31 }
 0x229   : > { %v481_v54 = vpop.f32.mrb[0].mxu0 }
 0x22a   : > { %v482_v55 = vadd.f32 %v718_v53, %v481_v54  ;;  %v758_v56 = vpop.f32.mrb[1].mxu0 }
 0x22c   : > { %v485_v57 = vmul.f32 %v482_v55, %v482_v55 }
 0x22e   : > { %v486_v58 = vmul.f32 %v485_v57, %v482_v55 }
 0x230   : > { %v487_v59 = vmul.f32 0.044715, %v486_v58 }
 0x232   : > { %v488_v60 = vadd.f32 %v487_v59, %v482_v55 }
 0x234   : > { %v489_v61 = vmul.f32 0.7978846, %v488_v60 }
 0x236   : > { %884 = vtanh.f32 %v489_v61 }
 0x240   : > { %v885_v62 = vpop.eup %884 }
 0x241   : > { %v491_v63 = vadd.f32 1.0, %v885_v62 }
 0x243   : > { %v492_v1 = vmul.f32 0.5, %v491_v63 }
 0x245   : > { %v493_v2 = vmul.f32 %v492_v1, %v482_v55 }
 0x247   : > { %792 = vmatmul.mubr.f32.vlgmr.msra.gmra.mrb[0].mxu1 %v493_v2 }
 0x31a   : > { %v583_v4 = vpop.f32.mrb[0].mxu1 }
 0x31b   : > { %v584_v6 = vadd.f32 %v720_v3, %v583_v4  ;;  %v793_v7 = vpop.f32.mrb[1].mxu1 }
 0x31d   : > { %v594_v8 = vmul.f32 %v721_v5, %v584_v6 }
 0x31f   : > { %v595_v9 = vadd.f32 %v594_v8, %v1078_v0 }
 0x321   : > { %596 = vst.msk [vmem:[%s351_s25] sm:$0xff] %vm371_vm0, %v595_v9 }
 0x322   : > { %899 = shalt.err (!%p896_p5)
}
 0x323   : > { %s900_s0 = scalar_lea.hbm %s1179_s16, 128  ;;  %s904_s23 = scalar_lea.hbm %s1235_s8, 256 }
 0x324   : > { %p901_p6 = scmp.ne.s32.totalorder %s1179_s16, %s900_s0  ;;  %p905_p10 = scmp.lt.u32.totalorder %s1179_s16, %s1235_s8 }
 0x325   : > { %p906_p11 = scmp.lt.u32.totalorder %s904_s23, %s900_s0  ;;  %p908_p13 = scmp.lt.u32.totalorder %s900_s0, %s1179_s16 }
 0x326   : > { %p902_p7 = pnand %p901_p6, %p1055_p4 }
 0x327   : > { %p907_p12 = por %p906_p11, %p905_p10 }
 0x328   : > { %p903_p9 = pneg %p902_p7 }
 0x329   : > { %p909_p0 = por %p908_p13, %p907_p12 }
 0x32b   : > { %p910_p1 = pnand %p909_p0, %p903_p9 }
 0x32d   : > { %913 = shalt.err (!%p910_p1)
}
 0x32e   : > { %824 = dma.vmem_to_hbm [thread:$0]  (%p1055_p4), %s1181_s26, 128, %s1179_s16, %s598_s19  }
 0x32f PF: > { %p830_p2 = scmp.ge.s32.totalorder %s964_s10, 2  ;;  %s624_s11 = sand.u32 1, %s944_s27  }
 0x330   : > { %s625_s20 = scalar_lea.sflag [#allocation3], %s624_s11 }
 0x331   : > { %p827_p3 = pnand %p830_p2, %p1062_p8 }
 0x333   : > { %939 = dma.done.wait (!%p827_p3), %s625_s20, 128  }
 0x334   : > { %941 = vsyncadd (!%p827_p3), %s625_s20, 4294967168  ;;  %s21_s10 = sadd.s32 1, %s964_s10   ;;  %s1240_s27 = smov %s948_s28 }
 0x335   : > { %p18_p5 = scmp.ge.s32.totalorder %s21_s10, 4   ;;  %s1241_s28 = smov %s952_s29 }
 0x336   : > { %s1242_s29 = smov %s1068_s18  ;;  %s1243_s30 = smov %s960_s9 }
 0x337   : > { %s1244_s9 = smov %s1246_s13  ;;  %20 = sbr.rel (!%p18_p5) target bundleno = 6 (0x6), region = 96 }
 0x33e   :  { %630 = vsyncpa [#allocation3], 1 }
 0x33f   :  { %632 = vsyncpa [#allocation3 + $0x1], 1 }

</bundles_post_ra>
